<compile_context>
chip_gen: v5e
topology: v5e:2x2
jax: 0.10.0
libtpu: 0.0.40
codegen_flags: <defaults>
</compile_context>

<pallas_src>
import functools
import math

import jax
import jax.numpy as jnp
from jax.experimental import pallas as pl
from jax.experimental.pallas import tpu as pltpu


# ----------------------------------------------------------------------------
# Helpers
# ----------------------------------------------------------------------------
def _round_up(v, m):
    return ((v + m - 1) // m) * m


def _pad2(a, rows, cols):
    return jnp.pad(a, ((0, rows - a.shape[0]), (0, cols - a.shape[1])))


def _choose_gin_tiles(Np):
    """Np is a multiple of 512.  TK >= TM; >=2 row tiles for megacore."""
    tk = min(1024, Np)
    tm = min(512, Np)
    if Np // tm < 2:
        tm = max(Np // 2, 256)
    return tm, tk


# ----------------------------------------------------------------------------
# Pallas kernels
# ----------------------------------------------------------------------------
def gin_layer_kernel(a_ref, x_ref, eps_ref, w1_ref, b1_ref, w2_ref, b2_ref,
                     bn_scale_ref, bn_shift_ref, out_ref, acc_ref, *, tm, tk):
    """Tiled GIN layer.

    grid = (row tiles i, reduction tiles k).  A is int8 (upcast to bf16 in-kernel),
    X is fully VMEM-resident; accumulation is f32; the (1+eps)*x_i self term and the
    fused MLP+BN+ReLU epilogue run on the last k tile.
    """
    i = pl.program_id(0)
    k = pl.program_id(1)

    @pl.when(k == 0)
    def _():
        acc_ref[...] = jnp.zeros_like(acc_ref)

    # int8 -> bf16 upcast just before the dot (HBM stores A at 1 B/elem).
    a = a_ref[...].astype(jnp.bfloat16)
    xk = x_ref[pl.ds(pl.multiple_of(k * tk, tk), tk), :]        # resident X, k slice
    acc_ref[...] += jnp.dot(a, xk, preferred_element_type=jnp.float32)

    @pl.when(k == pl.num_programs(1) - 1)
    def _():
        xi = x_ref[pl.ds(pl.multiple_of(i * tm, tm), tm), :].astype(jnp.float32)
        agg = acc_ref[...] + (1.0 + eps_ref[0, 0]) * xi          # [TM, Fp] f32
        h1 = jnp.dot(agg.astype(jnp.bfloat16), w1_ref[...],
                     preferred_element_type=jnp.float32) + b1_ref[...]
        h1 = jnp.maximum(h1, 0.0)
        h2 = jnp.dot(h1.astype(jnp.bfloat16), w2_ref[...],
                     preferred_element_type=jnp.float32) + b2_ref[...]
        h2 = jnp.maximum(h2, 0.0)
        bn = h2 * bn_scale_ref[...] + bn_shift_ref[...]          # BN (eval, running stats)
        out_ref[...] = jnp.maximum(bn, 0.0).astype(out_ref.dtype)   # outer F.relu, bf16 out


def pool_heads_kernel(pmean_ref, x_ref, w1c_ref, b1c_ref, w2b_ref, b2c_ref,
                      h_ref, ys_ref, acc_ref):
    """Mean pooling (tiled over node dim, bf16 inputs / f32 accumulation) +
    batched ensemble heads (W1 concatenated, W2 block-diagonal) in one call."""
    k = pl.program_id(0)

    @pl.when(k == 0)
    def _():
        acc_ref[...] = jnp.zeros_like(acc_ref)

    acc_ref[...] += jnp.dot(pmean_ref[...], x_ref[...],
                            preferred_element_type=jnp.float32)

    @pl.when(k == pl.num_programs(0) - 1)
    def _():
        h = acc_ref[...]                                         # [Gp, Hp] f32
        h_ref[...] = h
        z = jnp.dot(h.astype(jnp.bfloat16), w1c_ref[...],
                    preferred_element_type=jnp.float32) + b1c_ref[...]
        z = jnp.maximum(z, 0.0)
        # Dropout is identity in eval mode.
        ys_ref[...] = jnp.dot(z.astype(jnp.bfloat16), w2b_ref[...],
                              preferred_element_type=jnp.float32) + b2c_ref[...]


# ----------------------------------------------------------------------------
# Wrappers around pallas_call
# ----------------------------------------------------------------------------
def gin_layer(A_i8, x_bf16, eps, w1, b1, w2, b2, bn_scale, bn_shift, *, tm, tk):
    Np = A_i8.shape[0]
    Fp = x_bf16.shape[1]
    Hp = w2.shape[1]
    assert Np % tm == 0 and Np % tk == 0
    grid = (Np // tm, Np // tk)

    flops = 2 * Np * Np * Fp + 2 * Np * Fp * Hp + 2 * Np * Hp * Hp
    bytes_accessed = (A_i8.size * 1                       # adjacency (int8), read once
                      + x_bf16.size * 2                   # X resident, read once
                      + Np * Hp * 2                       # bf16 output
                      + (w1.size + w2.size) * 2)

    vmem_need = (2 * tm * tk                              # A tiles (int8, double-buffered)
                 + 2 * Np * Fp * 2                        # resident X (bf16)
                 + tm * Fp * 4                            # f32 accumulator
                 + 2 * (Fp * Hp + Hp * Hp) * 2            # weights (bf16)
                 + 2 * tm * Hp * 2                        # output buffers (bf16)
                 + 16 * Hp * 4)                           # biases / BN vectors
    vmem_limit = int(min(max(2 * vmem_need, 32 * 1024 * 1024), 64 * 1024 * 1024))

    kernel = functools.partial(gin_layer_kernel, tm=tm, tk=tk)

    return pl.pallas_call(
        kernel,
        out_shape=jax.ShapeDtypeStruct((Np, Hp), jnp.bfloat16),
        grid=grid,
        in_specs=[
            pl.BlockSpec((tm, tk), lambda i, k: (i, k)),          # A tile (int8)
            pl.BlockSpec((Np, Fp), lambda i, k: (0, 0)),          # X, fully resident (bf16)
            pl.BlockSpec(memory_space=pltpu.MemorySpace.SMEM),    # eps scalar (1,1) f32
            pl.BlockSpec((Fp, Hp), lambda i, k: (0, 0)),          # W1 (bf16)
            pl.BlockSpec((1, Hp), lambda i, k: (0, 0)),           # b1 (f32)
            pl.BlockSpec((Hp, Hp), lambda i, k: (0, 0)),          # W2 (bf16)
            pl.BlockSpec((1, Hp), lambda i, k: (0, 0)),           # b2 (f32)
            pl.BlockSpec((1, Hp), lambda i, k: (0, 0)),           # bn scale (f32)
            pl.BlockSpec((1, Hp), lambda i, k: (0, 0)),           # bn shift (f32)
        ],
        out_specs=pl.BlockSpec((tm, Hp), lambda i, k: (i, 0)),
        scratch_shapes=[pltpu.VMEM((tm, Fp), jnp.float32)],
        compiler_params=pltpu.CompilerParams(
            dimension_semantics=("parallel", "arbitrary"),
            vmem_limit_bytes=vmem_limit),
        cost_estimate=pl.CostEstimate(flops=int(flops), transcendentals=0,
                                      bytes_accessed=int(bytes_accessed)),
    )(A_i8, x_bf16, eps, w1, b1, w2, b2, bn_scale, bn_shift)


def pool_and_heads(pmean, x, w1c, b1c, w2b, b2c, *, tile):
    Gp, Np = pmean.shape
    Hp = x.shape[1]
    EHp = w1c.shape[1]
    ECp = w2b.shape[1]
    assert Np % tile == 0
    grid = (Np // tile,)

    return pl.pallas_call(
        pool_heads_kernel,
        out_shape=(jax.ShapeDtypeStruct((Gp, Hp), jnp.float32),
                   jax.ShapeDtypeStruct((Gp, ECp), jnp.float32)),
        grid=grid,
        in_specs=[
            pl.BlockSpec((Gp, tile), lambda k: (0, k)),           # mean-pool matrix (bf16)
            pl.BlockSpec((tile, Hp), lambda k: (k, 0)),           # node features (bf16)
            pl.BlockSpec((Hp, EHp), lambda k: (0, 0)),            # W1 concat (bf16)
            pl.BlockSpec((1, EHp), lambda k: (0, 0)),             # b1 concat (f32)
            pl.BlockSpec((EHp, ECp), lambda k: (0, 0)),           # W2 block-diag (bf16)
            pl.BlockSpec((1, ECp), lambda k: (0, 0)),             # b2 concat (f32)
        ],
        out_specs=(pl.BlockSpec((Gp, Hp), lambda k: (0, 0)),
                   pl.BlockSpec((Gp, ECp), lambda k: (0, 0))),
        scratch_shapes=[pltpu.VMEM((Gp, Hp), jnp.float32)],
        compiler_params=pltpu.CompilerParams(
            dimension_semantics=("arbitrary",),
            vmem_limit_bytes=32 * 1024 * 1024),
    )(pmean, x, w1c, b1c, w2b, b2c)


# ----------------------------------------------------------------------------
# Parameter construction (deterministic, PyTorch-like uniform init)
# ----------------------------------------------------------------------------
def init_linear(key, fan_in, fan_out):
    k1, k2 = jax.random.split(key)
    bound = 1.0 / math.sqrt(fan_in)
    w = jax.random.uniform(k1, (fan_in, fan_out), jnp.float32, -bound, bound)
    b = jax.random.uniform(k2, (1, fan_out), jnp.float32, -bound, bound)
    return w, b


def init_gin_conv(key, in_dim, hidden):
    k1, k2 = jax.random.split(key)
    w1, b1 = init_linear(k1, in_dim, hidden)
    w2, b2 = init_linear(k2, hidden, hidden)
    # BatchNorm1d at init (eval mode): gamma=1, beta=0, running_mean=0, running_var=1.
    bn_eps = 1e-5
    gamma = jnp.ones((1, hidden), jnp.float32)
    beta = jnp.zeros((1, hidden), jnp.float32)
    running_mean = jnp.zeros((1, hidden), jnp.float32)
    running_var = jnp.ones((1, hidden), jnp.float32)
    bn_scale = gamma / jnp.sqrt(running_var + bn_eps)
    bn_shift = beta - running_mean * bn_scale
    eps = jnp.zeros((1,), jnp.float32)  # GINConv train_eps=True, initialized to 0.
    return dict(eps=eps, w1=w1, b1=b1, w2=w2, b2=b2,
                bn_scale=bn_scale, bn_shift=bn_shift)


def init_mhead_gin(key, in_dim, num_classes, num_layers, hidden, num_ensemble):
    keys = jax.random.split(key, num_layers + 2 * num_ensemble)
    conv1 = init_gin_conv(keys[0], in_dim, hidden)
    convs = [init_gin_conv(keys[1 + i], hidden, hidden) for i in range(num_layers - 1)]
    lin1_w, lin1_b, lin2_w, lin2_b = [], [], [], []
    for e in range(num_ensemble):
        w, b = init_linear(keys[num_layers + 2 * e], hidden, hidden)
        lin1_w.append(w); lin1_b.append(b)
        w, b = init_linear(keys[num_layers + 2 * e + 1], hidden, num_classes)
        lin2_w.append(w); lin2_b.append(b)
    return dict(conv1=conv1, convs=convs,
                lin1_w=jnp.stack(lin1_w), lin1_b=jnp.stack(lin1_b),
                lin2_w=jnp.stack(lin2_w), lin2_b=jnp.stack(lin2_b))


# ----------------------------------------------------------------------------
# Forward pass (matches mheadGIN.forward in eval mode)
# ----------------------------------------------------------------------------
def mhead_gin_forward(x, edge_index, batch, params, num_graphs):
    N, Fin = x.shape
    H = params['conv1']['w2'].shape[1]
    E, _, C = params['lin2_w'].shape

    # Padded sizes: nodes to a multiple of 512 (keeps tiles big), lanes to 128.
    Np = _round_up(max(N, 512), 512)
    Fp = _round_up(Fin, 128)
    Hp = _round_up(H, 128)
    Cp = _round_up(C, 128)
    Gp = _round_up(max(num_graphs, 8), 8)
    tm, tk = _choose_gin_tiles(Np)
    pool_tile = min(512, Np)

    # Dense adjacency as int8: A[i, j] = number of edges j -> i (exact for counts <=127).
    src, dst = edge_index[0], edge_index[1]
    A = jnp.zeros((Np, Np), jnp.float32).at[dst, src].add(1.0)
    A = jnp.minimum(A, 127.0).astype(jnp.int8)

    # Dense mean-pool matrix (bf16 at the kernel boundary; f32 accumulation inside).
    one_hot = (batch[None, :] == jnp.arange(num_graphs)[:, None]).astype(jnp.float32)
    counts = jnp.maximum(one_hot.sum(axis=1, keepdims=True), 1.0)
    pmean = _pad2(one_hot / counts, Gp, Np).astype(jnp.bfloat16)

    xp = _pad2(x, Np, Fp).astype(jnp.bfloat16)

    xss_full = []
    convs = [params['conv1']] + list(params['convs'])
    for li, c in enumerate(convs):
        fin_p = Fp if li == 0 else Hp
        w1 = _pad2(c['w1'], fin_p, Hp).astype(jnp.bfloat16)
        b1 = _pad2(c['b1'], 1, Hp)
        w2 = _pad2(c['w2'], Hp, Hp).astype(jnp.bfloat16)
        b2 = _pad2(c['b2'], 1, Hp)
        bn_scale = _pad2(c['bn_scale'], 1, Hp)
        bn_shift = _pad2(c['bn_shift'], 1, Hp)
        eps = c['eps'].reshape(1, 1).astype(jnp.float32)
        x_out = gin_layer(A, xp, eps, w1, b1, w2, b2, bn_scale, bn_shift, tm=tm, tk=tk)
        xss_full.append(x_out)         # bf16, fed straight to the next layer
        xp = x_out

    # Ensemble heads packed into lane-dense matmuls:
    #   W1_cat [Hp, E*Hp], W2_block block-diagonal [E*Hp, E*Cp].
    w1c = jnp.concatenate([_pad2(params['lin1_w'][e], Hp, Hp) for e in range(E)],
                          axis=1).astype(jnp.bfloat16)
    b1c = jnp.concatenate([_pad2(params['lin1_b'][e], 1, Hp) for e in range(E)], axis=1)
    w2b = jnp.zeros((E * Hp, E * Cp), jnp.float32)
    for e in range(E):
        w2b = w2b.at[e * Hp:(e + 1) * Hp, e * Cp:(e + 1) * Cp].set(
            _pad2(params['lin2_w'][e], Hp, Cp))
    w2b = w2b.astype(jnp.bfloat16)
    b2c = jnp.concatenate([_pad2(params['lin2_b'][e], 1, Cp) for e in range(E)], axis=1)

    # In the PyTorch loop `h = self.pool(x, batch)` is recomputed each iteration;
    # only the last value survives, so pooling the final x is equivalent.
    h_full, ys_full = pool_and_heads(pmean, xss_full[-1], w1c, b1c, w2b, b2c,
                                     tile=pool_tile)

    # Slice the lane/sublane padding off (pure wrapper-side layout plumbing).
    xss = [xf[:N, :H] for xf in xss_full]
    h = h_full[:num_graphs, :H]
    hs = [h for _ in range(E)]
    ys = [ys_full[:num_graphs, e * Cp:e * Cp + C] for e in range(E)]
    return [edge_index, xss, hs], ys


# ----------------------------------------------------------------------------
# Pure-JAX reference (mirrors the kernel's bf16 matmul inputs / f32 accumulation)
# ----------------------------------------------------------------------------
def ref_gin_layer(A, xb, c):
    Ab = A.astype(jnp.bfloat16)
    agg = jnp.dot(Ab, xb, preferred_element_type=jnp.float32) \
        + (1.0 + c['eps'][0]) * xb.astype(jnp.float32)
    h1 = jnp.maximum(jnp.dot(agg.astype(jnp.bfloat16), c['w1'].astype(jnp.bfloat16),
                             preferred_element_type=jnp.float32) + c['b1'], 0.0)
    h2 = jnp.maximum(jnp.dot(h1.astype(jnp.bfloat16), c['w2'].astype(jnp.bfloat16),
                             preferred_element_type=jnp.float32) + c['b2'], 0.0)
    out = jnp.maximum(h2 * c['bn_scale'] + c['bn_shift'], 0.0)
    return out.astype(jnp.bfloat16)


def ref_forward(x, edge_index, batch, params, num_graphs):
    N = x.shape[0]
    src, dst = edge_index[0], edge_index[1]
    A = jnp.zeros((N, N), jnp.float32).at[dst, src].add(1.0)
    one_hot = (batch[None, :] == jnp.arange(num_graphs)[:, None]).astype(jnp.float32)
    pmean = (one_hot / jnp.maximum(one_hot.sum(axis=1, keepdims=True), 1.0)
             ).astype(jnp.bfloat16)
    xb = x.astype(jnp.bfloat16)
    xss = []
    xb = ref_gin_layer(A, xb, params['conv1'])
    xss.append(xb)
    for c in params['convs']:
        xb = ref_gin_layer(A, xb, c)
        xss.append(xb)
    h = jnp.dot(pmean, xb, preferred_element_type=jnp.float32)
    ys = []
    for e in range(params['lin1_w'].shape[0]):
        z = jnp.maximum(
            jnp.dot(h.astype(jnp.bfloat16), params['lin1_w'][e].astype(jnp.bfloat16),
                    preferred_element_type=jnp.float32) + params['lin1_b'][e], 0.0)
        ys.append(jnp.dot(z.astype(jnp.bfloat16), params['lin2_w'][e].astype(jnp.bfloat16),
                          preferred_element_type=jnp.float32) + params['lin2_b'][e])
    return xss, h, ys


# ----------------------------------------------------------------------------
if __name__ == "__main__":
    # Small synthetic graph batch: 2 graphs of 8 nodes each (bidirectional rings).
    N, IN_DIM, HIDDEN, NUM_CLASSES = 16, 8, 32, 4
    NUM_LAYERS, NUM_ENSEMBLE, NUM_GRAPHS = 3, 2, 2

    key = jax.random.PRNGKey(0)
    k_x, k_params = jax.random.split(key)

    x = jax.random.normal(k_x, (N, IN_DIM), jnp.float32)

    srcs, dsts = [], []
    for g in range(NUM_GRAPHS):
        base = g * 8
        for i in range(8):
            a, b = base + i, base + (i + 1) % 8
            srcs += [a, b]
            dsts += [b, a]
    edge_index = jnp.array([srcs, dsts], dtype=jnp.int32)     # [2, E]
    batch = jnp.array([0] * 8 + [1] * 8, dtype=jnp.int32)     # [N]

    params = init_mhead_gin(k_params, IN_DIM, NUM_CLASSES, NUM_LAYERS, HIDDEN, NUM_ENSEMBLE)

    (edge_out, xss, hs), ys = mhead_gin_forward(x, edge_index, batch, params, NUM_GRAPHS)
    jax.block_until_ready(xss)
    jax.block_until_ready(hs)
    jax.block_until_ready(ys)

    # Verify against the pure-JAX reference (same bf16 matmul inputs, f32 accumulation).
    ref_xss, ref_h, ref_ys = ref_forward(x, edge_index, batch, params, NUM_GRAPHS)
    for a, b in zip(xss, ref_xss):
        assert jnp.allclose(a.astype(jnp.float32), b.astype(jnp.float32),
                            atol=2e-2, rtol=2e-2), "layer output mismatch"
    assert jnp.allclose(hs[0], ref_h, atol=2e-2, rtol=2e-2), "pooled h mismatch"
    for a, b in zip(ys, ref_ys):
        assert jnp.allclose(a, b, atol=2e-2, rtol=2e-2), "head output mismatch"

    print("KERNEL_OK")
</pallas_src>

<mosaic_0001>
module attributes {stable_mosaic.version = 11 : i64} {
  func.func @gin_layer_kernel(%arg0: i32, %arg1: i32, %arg2: memref<256x512xi8, #tpu.memory_space<vmem>>, %arg3: memref<512x128xbf16, #tpu.memory_space<vmem>>, %arg4: memref<1x1xf32, #tpu.memory_space<smem>>, %arg5: memref<128x128xbf16, #tpu.memory_space<vmem>>, %arg6: memref<1x128xf32, #tpu.memory_space<vmem>>, %arg7: memref<128x128xbf16, #tpu.memory_space<vmem>>, %arg8: memref<1x128xf32, #tpu.memory_space<vmem>>, %arg9: memref<1x128xf32, #tpu.memory_space<vmem>>, %arg10: memref<1x128xf32, #tpu.memory_space<vmem>>, %arg11: memref<256x128xbf16, #tpu.memory_space<vmem>>, %arg12: memref<256x128xf32, #tpu.memory_space<vmem>>) attributes {dimension_semantics = [#tpu.dimension_semantics<parallel>, #tpu.dimension_semantics<arbitrary>], iteration_bounds = array<i64: 2, 1>, scalar_prefetch = 0 : i64, scratch_operands = 1 : i64, tpu.core_type = #tpu.core_type<tc>, window_params = [{transform_indices = @transform_0, window_bounds = array<i64: 256, 512>}, {pipeline_mode = #tpu.pipeline_mode<synchronous>, transform_indices = @transform_1, window_bounds = array<i64: 512, 128>}, {transform_indices = @transform_2, window_bounds = array<i64: 1, 1>}, {pipeline_mode = #tpu.pipeline_mode<synchronous>, transform_indices = @transform_3, window_bounds = array<i64: 128, 128>}, {pipeline_mode = #tpu.pipeline_mode<synchronous>, transform_indices = @transform_4, window_bounds = array<i64: 1, 128>}, {pipeline_mode = #tpu.pipeline_mode<synchronous>, transform_indices = @transform_5, window_bounds = array<i64: 128, 128>}, {pipeline_mode = #tpu.pipeline_mode<synchronous>, transform_indices = @transform_6, window_bounds = array<i64: 1, 128>}, {pipeline_mode = #tpu.pipeline_mode<synchronous>, transform_indices = @transform_7, window_bounds = array<i64: 1, 128>}, {pipeline_mode = #tpu.pipeline_mode<synchronous>, transform_indices = @transform_8, window_bounds = array<i64: 1, 128>}, {transform_indices = @transform_9, window_bounds = array<i64: 256, 128>}]} {
    %c0_i32 = arith.constant 0 : i32
    %0 = arith.cmpi eq, %arg1, %c0_i32 : i32
    %1 = arith.extui %0 : i1 to i32
    %c0_i32_0 = arith.constant 0 : i32
    %2 = arith.cmpi ne, %1, %c0_i32_0 : i32
    scf.if %2 {
      %cst_9 = arith.constant 0.000000e+00 : f32
      %16 = vector.broadcast %cst_9 : f32 to vector<256x128xf32>
      %c0_10 = arith.constant 0 : index
      %c0_11 = arith.constant 0 : index
      %17 = vector.load %arg12[%c0_10, %c0_11] : memref<256x128xf32, #tpu.memory_space<vmem>>, vector<256x128xf32>
      tpu.vector_store %arg12[%c0_10, %c0_11], %16 {strides = array<i32>} : memref<256x128xf32, #tpu.memory_space<vmem>>, vector<256x128xf32>,
    } else {
    }
    %c0 = arith.constant 0 : index
    %c0_1 = arith.constant 0 : index
    %3 = vector.load %arg2[%c0, %c0_1] : memref<256x512xi8, #tpu.memory_space<vmem>>, vector<256x512xi8>
    %4 = arith.sitofp %3 : vector<256x512xi8> to vector<256x512xbf16>
    %c512_i32 = arith.constant 512 : i32
    %5 = arith.muli %arg1, %c512_i32 : i32
    %6 = tpu.assume_multiple %5, 512 : i32
    %7 = arith.index_cast %6 : i32 to index
    %c0_2 = arith.constant 0 : index
    %8 = vector.load %arg3[%7, %c0_2] : memref<512x128xbf16, #tpu.memory_space<vmem>>, vector<512x128xbf16>
    %c0_3 = arith.constant 0 : index
    %c0_4 = arith.constant 0 : index
    %9 = vector.load %arg12[%c0_3, %c0_4] : memref<256x128xf32, #tpu.memory_space<vmem>>, vector<256x128xf32>
    %cst = arith.constant dense<0.000000e+00> : vector<256x128xf32>
    %10 = tpu.matmul %4, %8, %cst {dimension_numbers = #tpu.dot_dimension_numbers<[1], [0], [0], [1], [0, 0, 1, 1], [], []>} : vector<256x512xbf16>, vector<512x128xbf16>, vector<256x128xf32> -> vector<256x128xf32>
    %11 = arith.addf %9, %10 : vector<256x128xf32>
    %c0_5 = arith.constant 0 : index
    %c0_6 = arith.constant 0 : index
    %12 = vector.load %arg12[%c0_5, %c0_6] : memref<256x128xf32, #tpu.memory_space<vmem>>, vector<256x128xf32>
    tpu.vector_store %arg12[%c0_5, %c0_6], %11 {strides = array<i32>} : memref<256x128xf32, #tpu.memory_space<vmem>>, vector<256x128xf32>,
    %c0_i32_7 = arith.constant 0 : i32
    %13 = arith.cmpi eq, %arg1, %c0_i32_7 : i32
    %14 = arith.extui %13 : i1 to i32
    %c0_i32_8 = arith.constant 0 : i32
    %15 = arith.cmpi ne, %14, %c0_i32_8 : i32
    scf.if %15 {
      %c256_i32 = arith.constant 256 : i32
      %16 = arith.muli %arg0, %c256_i32 : i32
      %17 = tpu.assume_multiple %16, 256 : i32
      %18 = arith.index_cast %17 : i32 to index
      %c0_9 = arith.constant 0 : index
      %19 = vector.load %arg3[%18, %c0_9] : memref<512x128xbf16, #tpu.memory_space<vmem>>, vector<256x128xbf16>
      %20 = arith.extf %19 : vector<256x128xbf16> to vector<256x128xf32>
      %c0_10 = arith.constant 0 : index
      %c0_11 = arith.constant 0 : index
      %21 = vector.load %arg12[%c0_10, %c0_11] : memref<256x128xf32, #tpu.memory_space<vmem>>, vector<256x128xf32>
      %c0_12 = arith.constant 0 : index
      %c0_13 = arith.constant 0 : index
      %22 = memref.load %arg4[%c0_12, %c0_13] : memref<1x1xf32, #tpu.memory_space<smem>>
      %cst_14 = arith.constant 1.000000e+00 : f32
      %23 = arith.addf %cst_14, %22 : f32
      %24 = vector.broadcast %23 : f32 to vector<256x128xf32>
      %25 = arith.mulf %24, %20 : vector<256x128xf32>
      %26 = arith.addf %21, %25 : vector<256x128xf32>
      %27 = arith.truncf %26 : vector<256x128xf32> to vector<256x128xbf16>
      %c0_15 = arith.constant 0 : index
      %c0_16 = arith.constant 0 : index
      %28 = vector.load %arg5[%c0_15, %c0_16] : memref<128x128xbf16, #tpu.memory_space<vmem>>, vector<128x128xbf16>
      %cst_17 = arith.constant dense<0.000000e+00> : vector<256x128xf32>
      %29 = tpu.matmul %27, %28, %cst_17 {dimension_numbers = #tpu.dot_dimension_numbers<[1], [0], [0], [1], [0, 0, 1, 1], [], []>} : vector<256x128xbf16>, vector<128x128xbf16>, vector<256x128xf32> -> vector<256x128xf32>
      %c0_18 = arith.constant 0 : index
      %c0_19 = arith.constant 0 : index
      %30 = vector.load %arg6[%c0_18, %c0_19] : memref<1x128xf32, #tpu.memory_space<vmem>>, vector<1x128xf32>
      %31 = vector.broadcast %30 : vector<1x128xf32> to vector<256x128xf32>
      %32 = arith.addf %29, %31 : vector<256x128xf32>
      %cst_20 = arith.constant 0.000000e+00 : f32
      %33 = vector.broadcast %cst_20 : f32 to vector<256x128xf32>
      %34 = arith.maximumf %32, %33 : vector<256x128xf32>
      %35 = arith.truncf %34 : vector<256x128xf32> to vector<256x128xbf16>
      %c0_21 = arith.constant 0 : index
      %c0_22 = arith.constant 0 : index
      %36 = vector.load %arg7[%c0_21, %c0_22] : memref<128x128xbf16, #tpu.memory_space<vmem>>, vector<128x128xbf16>
      %cst_23 = arith.constant dense<0.000000e+00> : vector<256x128xf32>
      %37 = tpu.matmul %35, %36, %cst_23 {dimension_numbers = #tpu.dot_dimension_numbers<[1], [0], [0], [1], [0, 0, 1, 1], [], []>} : vector<256x128xbf16>, vector<128x128xbf16>, vector<256x128xf32> -> vector<256x128xf32>
      %c0_24 = arith.constant 0 : index
      %c0_25 = arith.constant 0 : index
      %38 = vector.load %arg8[%c0_24, %c0_25] : memref<1x128xf32, #tpu.memory_space<vmem>>, vector<1x128xf32>
      %39 = vector.broadcast %38 : vector<1x128xf32> to vector<256x128xf32>
      %40 = arith.addf %37, %39 : vector<256x128xf32>
      %cst_26 = arith.constant 0.000000e+00 : f32
      %41 = vector.broadcast %cst_26 : f32 to vector<256x128xf32>
      %42 = arith.maximumf %40, %41 : vector<256x128xf32>
      %c0_27 = arith.constant 0 : index
      %c0_28 = arith.constant 0 : index
      %43 = vector.load %arg9[%c0_27, %c0_28] : memref<1x128xf32, #tpu.memory_space<vmem>>, vector<1x128xf32>
      %44 = vector.broadcast %43 : vector<1x128xf32> to vector<256x128xf32>
      %45 = arith.mulf %42, %44 : vector<256x128xf32>
      %c0_29 = arith.constant 0 : index
      %c0_30 = arith.constant 0 : index
      %46 = vector.load %arg10[%c0_29, %c0_30] : memref<1x128xf32, #tpu.memory_space<vmem>>, vector<1x128xf32>
      %47 = vector.broadcast %46 : vector<1x128xf32> to vector<256x128xf32>
      %48 = arith.addf %45, %47 : vector<256x128xf32>
      %cst_31 = arith.constant 0.000000e+00 : f32
      %49 = vector.broadcast %cst_31 : f32 to vector<256x128xf32>
      %50 = arith.maximumf %48, %49 : vector<256x128xf32>
      %51 = arith.truncf %50 : vector<256x128xf32> to vector<256x128xbf16>
      %c0_32 = arith.constant 0 : index
      %c0_33 = arith.constant 0 : index
      %52 = vector.load %arg11[%c0_32, %c0_33] : memref<256x128xbf16, #tpu.memory_space<vmem>>, vector<256x128xbf16>
      tpu.vector_store %arg11[%c0_32, %c0_33], %51 {strides = array<i32>} : memref<256x128xbf16, #tpu.memory_space<vmem>>, vector<256x128xbf16>,
    } else {
    }
    return
  }
  func.func @transform_0(%arg0: i32, %arg1: i32) -> (i32, i32) {
    %c0_i32 = arith.constant 0 : i32
    return %arg0, %arg1 : i32, i32
  }
  func.func @transform_1(%arg0: i32, %arg1: i32) -> (i32, i32) {
    %c0_i32 = arith.constant 0 : i32
    %c0_i32_0 = arith.constant 0 : i32
    %c0_i32_1 = arith.constant 0 : i32
    return %c0_i32, %c0_i32_0 : i32, i32
  }
  func.func @transform_2(%arg0: i32, %arg1: i32) -> (i32, i32) {
    %c0_i32 = arith.constant 0 : i32
    %c0_i32_0 = arith.constant 0 : i32
    %c0_i32_1 = arith.constant 0 : i32
    return %c0_i32, %c0_i32_0 : i32, i32
  }
  func.func @transform_3(%arg0: i32, %arg1: i32) -> (i32, i32) {
    %c0_i32 = arith.constant 0 : i32
    %c0_i32_0 = arith.constant 0 : i32
    %c0_i32_1 = arith.constant 0 : i32
    return %c0_i32, %c0_i32_0 : i32, i32
  }
  func.func @transform_4(%arg0: i32, %arg1: i32) -> (i32, i32) {
    %c0_i32 = arith.constant 0 : i32
    %c0_i32_0 = arith.constant 0 : i32
    %c0_i32_1 = arith.constant 0 : i32
    return %c0_i32, %c0_i32_0 : i32, i32
  }
  func.func @transform_5(%arg0: i32, %arg1: i32) -> (i32, i32) {
    %c0_i32 = arith.constant 0 : i32
    %c0_i32_0 = arith.constant 0 : i32
    %c0_i32_1 = arith.constant 0 : i32
    return %c0_i32, %c0_i32_0 : i32, i32
  }
  func.func @transform_6(%arg0: i32, %arg1: i32) -> (i32, i32) {
    %c0_i32 = arith.constant 0 : i32
    %c0_i32_0 = arith.constant 0 : i32
    %c0_i32_1 = arith.constant 0 : i32
    return %c0_i32, %c0_i32_0 : i32, i32
  }
  func.func @transform_7(%arg0: i32, %arg1: i32) -> (i32, i32) {
    %c0_i32 = arith.constant 0 : i32
    %c0_i32_0 = arith.constant 0 : i32
    %c0_i32_1 = arith.constant 0 : i32
    return %c0_i32, %c0_i32_0 : i32, i32
  }
  func.func @transform_8(%arg0: i32, %arg1: i32) -> (i32, i32) {
    %c0_i32 = arith.constant 0 : i32
    %c0_i32_0 = arith.constant 0 : i32
    %c0_i32_1 = arith.constant 0 : i32
    return %c0_i32, %c0_i32_0 : i32, i32
  }
  func.func @transform_9(%arg0: i32, %arg1: i32) -> (i32, i32) {
    %c0_i32 = arith.constant 0 : i32
    %c0_i32_0 = arith.constant 0 : i32
    return %arg0, %c0_i32 : i32, i32
  }
}

</mosaic_0001>

<bundles_post_ra>
// kernel: tpu_custom_call.1
= control target key start
LH: loop header
LB: loop body
LE: loop exit
PB: predicated region body
PF: predicated region fallthrough
CT: control target
= control target key end

     0   :  { %s3722_s0 = inlined_call_operand.hbm [shape: s8[512,512], index: 0, kind: input, shape index: {}]   ;;  %s3723_s1 = inlined_call_operand.hbm [shape: bf16[512,128], index: 1, kind: input, shape index: {}]   ;;  %s3724_s2 = inlined_call_operand.<no memory space> [shape: f32[1,1], index: 2, kind: input, shape index: {}]   ;;  %s3725_s3 = inlined_call_operand.hbm [shape: bf16[128,128], index: 3, kind: input, shape index: {}]   ;;  %s3726_s4 = inlined_call_operand.vmem [shape: f32[1,128], index: 4, kind: input, shape index: {}]   ;;  %s3727_s5 = inlined_call_operand.hbm [shape: bf16[128,128], index: 5, kind: input, shape index: {}]   ;;  %s3728_s6 = inlined_call_operand.vmem [shape: f32[1,128], index: 6, kind: input, shape index: {}]   ;;  %s3729_s7 = inlined_call_operand.vmem [shape: f32[1,128], index: 7, kind: input, shape index: {}]   ;;  %s3730_s8 = inlined_call_operand.vmem [shape: f32[1,128], index: 8, kind: input, shape index: {}]   ;;  %s3731_s9 = inlined_call_operand.hbm [shape: bf16[512,128], index: 9, kind: output, shape index: {}]  }
   0x1   :  { %3736 = sst [smem:[#allocation20_spill]] %s3723_s1 }
   0x2   :  { %3737 = sst [smem:[#allocation21_spill]] %s3725_s3 }
   0x3   :  { %3738 = sst [smem:[#allocation22_spill]] %s3727_s5 }
   0x4   :  { %14 = sst [smem:[#allocation3]] %s3724_s2 }
   0x5   :  { %15 = vsyncpa [#allocation5], 0 }
   0x6   :  { %17 = vsyncpa [#allocation5 + $0x1], 0 }
   0x7   :  { %18 = vsyncpa [#allocation8], 0 }
   0x8   :  { %19 = vsyncpa [#allocation11], 0 }
   0x9   :  { %20 = vsyncpa [#allocation6], 0 }
   0xa   :  { %22 = vsyncpa [#allocation6 + $0x1], 0  ;;  %s3241_s11 = smov 0   ;;  %s3243_s12 = smov 0  }
   0xb   :  { %s3245_s13 = smov 0   ;;  %s3247_s14 = smov 0  }
   0xc   :  { %s3249_s15 = smov 0   ;;  %s3251_s16 = smov 0  }
   0xd LB: > { %3739 = sst [smem:[#allocation17_spill]] %s3177_s16  ;;  %s2407_s2 = sadd.s32 4294967295, %s3177_s16   ;;  %s3177_s16 = sphi %s3251_s16, %s28_s16   ;;  %s3173_s15 = sphi %s3249_s15, %s3760_s15   ;;  %s3169_s14 = sphi %s3247_s14, %s3759_s14   ;;  %s3165_s13 = sphi %s3245_s13, %s3758_s13   ;;  %s3161_s12 = sphi %s3243_s12, %s3757_s12   ;;  %s3157_s11 = sphi %s3241_s11, %s3756_s11  }
   0xe   : > { %s2408_s17 = sadd.s32 4294967294, %s3177_s16   ;;  %p62_p0 = scmp.ne.s32.totalorder %s3161_s12, %s3157_s11 }
   0xf   : > { %p3275_p1 = scmp.eq.s32.totalorder %s2407_s2, 0  ;;  %p3279_p2 = scmp.eq.s32.totalorder %s2407_s2, 1 }
  0x10   : > { %p260_p3 = scmp.eq.s32.totalorder %s2408_s17, 1  ;;  %p2409_p5 = scmp.ge.s32.totalorder %s3177_s16, 1 }
  0x11   : > { %p3285_p4 = por %p3275_p1, %p62_p0  ;;  %p267_p7 = scmp.lt.s32.totalorder %s3177_s16, 3 }
  0x12   : > { %p3290_p6 = por %p260_p3, %p62_p0  ;;  %s3745_s1 = sld [smem:[#allocation20_spill]] }
  0x13   : > { %p3298_p8 = pnand %p2409_p5, %p267_p7  ;;  %s3179_s26 = smov [#allocation7]  }
  0x14   : > { %s3743_s21 = scalar_select %p3290_p6, 1, 0 }
  0x15   : > { %p2880_p9 = pneg %p3298_p8  ;;  %s280_s27 = sshll.u32 %s3179_s26, 4  ;;  %s281_s27 = int_to_ptr.vmem [resolvable:$true] %s280_s27 }
  0x16   : > { %3744 = sst [smem:[#allocation18_spill]] %s3743_s21  ;;  %p2413_p11 = scmp.ge.s32.totalorder %s3177_s16, 2 }
  0x17   : > { %p3306_p10 = pnand %p2880_p9, %p3275_p1  ;;  %s3748_s3 = sld [smem:[#allocation21_spill]] }
  0x18   : > { %s278_s24 = sshll.u32 %s3745_s1, 4  ;;  %s3180_s2 = smov 64   ;;  %s279_s24 = int_to_ptr.hbm [resolvable:$true] %s278_s24 }
  0x19   : > { %s3181_s17 = smov 4   ;;  %s3182_s22 = smov [#allocation9]  }
  0x1a   : > { %2883 = dma.hbm_to_vmem [thread:$0]  (!%p3306_p10), %s279_s24, 4096, %s281_s27, [#allocation8], %s3180_s2, %s3180_s2, %s3181_s17  }
  0x1b   : > { %s297_s23 = sshll.u32 %s3182_s22, 4  ;;  %s3749_s5 = sld [smem:[#allocation22_spill]]  ;;  %s298_s23 = int_to_ptr.vmem [resolvable:$true] %s297_s23 }
  0x1c   : > { %s3183_s29 = smov [#allocation10]   ;;  %s40_s24 = sadd.s32 1, %s3173_s15 }
  0x1d   : > { %s295_s10 = sshll.u32 %s3748_s3, 4  ;;  %s314_s30 = sshll.u32 %s3183_s29, 4  ;;  %s296_s10 = int_to_ptr.hbm [resolvable:$true] %s295_s10  ;;  %s315_s30 = int_to_ptr.vmem [resolvable:$true] %s314_s30 }
  0x1e   : > { %2886 = dma.hbm_to_vmem [thread:$0]  (!%p3306_p10), %s296_s10, 1024, %s298_s23, [#allocation8], %s3180_s2, %s3180_s2, %s3181_s17  }
  0x1f   : > { %p42_p12 = scmp.ge.s32.totalorder %s40_s24, 2  ;;  %s49_s27 = sadd.s32 1, %s3165_s13 }
  0x20   : > { %p56_p13 = scmp.ne.s32.totalorder %s3165_s13, %s3161_s12  ;;  %p57_p0 = scmp.eq.s32.totalorder %s3177_s16, 0 }
  0x21   : > { %s312_s21 = sshll.u32 %s3749_s5, 4  ;;  %s3762_s24 = smov (%p42_p12, %s40_s24), 0  ;;  %s313_s21 = int_to_ptr.hbm [resolvable:$true] %s312_s21 }
  0x22   : > { %2889 = dma.hbm_to_vmem [thread:$0]  (!%p3306_p10), %s313_s21, 1024, %s315_s30, [#allocation11], %s3180_s2, %s3180_s2, %s3181_s17  }
  0x23   : > { %3750 = sst [smem:[#allocation19_spill]] %s3762_s24  ;;  %p3330_p3 = por %p57_p0, %p56_p13 }
  0x24   : > { %p3336_p5 = por %p3279_p2, %p56_p13  ;;  %s44_s28 = ssub.s32 %s3173_s15, %s3762_s24 }
  0x25   : > { %p2901_p7 = scmp.lt.s32.totalorder %s3177_s16, 2  ;;  %p47_p9 = scmp.eq.s32.totalorder %s44_s28, 0 }
  0x26   : > { %s337_s21 = sand.u32 1, %s3165_s13   ;;  %s2624_s22 = sshll.u32 %s3173_s15, 8 }
  0x27   : > { %s2414_s2 = sshll.u32 %s337_s21, 8  ;;  %s349_s29 = scalar_lea.hbm %s3722_s0, %s2624_s22 }
  0x28   : > { %s3345_s17 = scalar_select %p47_p9, %s3165_s13, %s49_s27  }
  0x29   : > { %s341_s30 = scalar_lea.vmem [#allocation4], %s2414_s2  ;;  %s350_s19 = sshll.u32 %s349_s29, 4  ;;  %s351_s19 = int_to_ptr.hbm [resolvable:$true] %s350_s19 }
  0x2a   : > { %s352_s3 = sshll.u32 %s341_s30, 4  ;;  %p2891_p2 = pnand %p2901_p7, %p3330_p3  ;;  %s353_s3 = int_to_ptr.vmem [resolvable:$true] %s352_s3 }
  0x2b   : > { %s338_s5 = scalar_lea.sflag [#allocation5], %s337_s21  ;;  %s3184_s24 = smov 512  }
  0x2c   : > { %s3185_s16 = smov 32   ;;  %364 = sbr.rel (%p3298_p8) target bundleno = 892 (0x37c), region = 56 }
  0x2d   : > { %2893 = dma.hbm_to_vmem [thread:$0]  (!%p2891_p2), %s351_s19, 4096, %s353_s3, %s338_s5, %s3184_s24, %s3184_s24, %s3185_s16  }
  0x2e   : > { %s3356_s27 = sand.u32 (!%p3298_p8), 1, %s3161_s12  }
  0x2f   : > { %s2419_s28 = sshll.u32 (!%p3298_p8), %s3356_s27, 8  ;;  %s367_s2 = scalar_lea.sflag (!%p3298_p8), [#allocation5], %s3356_s27 }
  0x30   : > { %s3360_s22 = scalar_lea.vmem (!%p3298_p8), [#allocation4], %s2419_s28 }
  0x31   : > { %3140 = dma.done.wait (%p3285_p4), %s367_s2, 4096  }
  0x32   : > { %3142 = vsyncadd (%p3285_p4), %s367_s2, 4294963200 }
  0x33   : > { %3144 = dma.done.wait (%p3275_p1), [#allocation8], 5120  }
  0x34   : > { %3146 = vsyncadd (%p3275_p1), [#allocation8], 4294962176 }
  0x35   : > { %3148 = dma.done.wait (%p3275_p1), [#allocation11], 1024  }
  0x36   : > { %3150 = vsyncadd (%p3275_p1), [#allocation11], 4294966272  ;;  %v2632_v0 = vld [vmem:[#allocation7 + $0x38] sm:$0xff]  ;;  %v2631_v2 = vld [vmem:[#allocation7 + $0x30] sm:$0xff]  ;;  %s2552_s3 = sshll.u32 %s3169_s14, 8  ;;  %s1629_s16 = sld [smem:[#allocation3]] }
  0x37   : > { %v2640_v1 = vld [vmem:[#allocation7 + $0x78] sm:$0xff]  ;;  %2848 = vmatpush.bf16.msra.mxu2 %v2632_v0  ;;  %v2639_v3 = vld [vmem:[#allocation7 + $0x70] sm:$0xff]  ;;  %1105 = vmatpush.bf16.msra.mxu0 %v2632_v0  ;;  %v2630_v4 = vld [vmem:[#allocation7 + $0x28] sm:$0xff]  ;;  %s1529_s5 = sshra.s32 %s2552_s3, 3  ;;  %s2423_s28 = sshll.u32 %s3356_s27, 7 }
  0x38   : > { %2856 = vmatpush.bf16.msra.mxu3 %v2640_v1  ;;  %1194 = vmatpush.bf16.msra.mxu1 %v2640_v1  ;;  %v2638_v5 = vld [vmem:[#allocation7 + $0x68] sm:$0xff]  ;;  %v2629_v6 = vld [vmem:[#allocation7 + $0x20] sm:$0xff]  ;;  %v2628_v8 = vld [vmem:[#allocation7 + $0x18] sm:$0xff]  ;;  %s2553_s18 = sshll.u32 %s1529_s5, 2  ;;  %s3564_s2 = scalar_lea.vmem [#allocation12], %s2423_s28 }
  0x39   : > { %v2637_v7 = vld [vmem:[#allocation7 + $0x60] sm:$0xff]  ;;  %v2636_v9 = vld [vmem:[#allocation7 + $0x58] sm:$0xff]  ;;  %v2627_v10 = vld [vmem:[#allocation7 + $0x10] sm:$0xff]  ;;  %s3439_s25 = scalar_lea.vmem [#allocation7], %s2553_s18  ;;  %s2287_s18 = sshll.u32 %s3564_s2, 4  ;;  %s2288_s18 = int_to_ptr.vmem [resolvable:$true] %s2287_s18 }
  0x3a   : > { %v2635_v11 = vld [vmem:[#allocation7 + $0x50] sm:$0xff]  ;;  %v476_v12 = vld [vmem:[%s3360_s22 + $0x80] sm:$0xff]  ;;  %v477_v13 = vld [vmem:[%s3360_s22 + $0x88] sm:$0xff]  ;;  %s3107_s23 = scalar_lea.hbm %s3731_s9, 256 }
  0x3b   : > { %2849 = vmatpush.bf16.msra.mxu2 %v2631_v2  ;;  %1106 = vmatpush.bf16.msra.mxu0 %v2631_v2  ;;  %v556_v14 = vunpack.c.0.s8 %v476_v12  ;;  %v560_v15 = vunpack.c.1.s8 %v476_v12  ;;  %v557_v16 = vunpack.c.0.s8 %v477_v13  ;;  %v561_v17 = vunpack.c.1.s8 %v477_v13  ;;  %v2626_v18 = vld [vmem:[#allocation7 + $0x8] sm:$0xff]  ;;  %v2625_v24 = vld [vmem:[#allocation7] sm:$0xff]  ;;  %v2648_v26 = vld [vmem:[#allocation7 + $0xb8] sm:$0xff] }
  0x3c   : > { %2857 = vmatpush.bf16.msra.mxu3 %v2639_v3  ;;  %1195 = vmatpush.bf16.msra.mxu1 %v2639_v3  ;;  %v2634_v19 = vld [vmem:[#allocation7 + $0x48] sm:$0xff]  ;;  %v2633_v25 = vld [vmem:[#allocation7 + $0x40] sm:$0xff]  ;;  %v2656_v27 = vld [vmem:[#allocation7 + $0xf8] sm:$0xff]  ;;  %v564_v34 = vunpack.c.2.s8 %v476_v12  ;;  %v568_v35 = vunpack.c.3.s8 %v476_v12  ;;  %v565_v36 = vunpack.c.2.s8 %v477_v13  ;;  %v569_v37 = vunpack.c.3.s8 %v477_v13  ;;  %s1630_s20 = sadd.f32 1.0, %s1629_s16 }
  0x3d   : > { %v684_v20 = vcvt.s32.f32 %v556_v14  ;;  %v688_v21 = vcvt.s32.f32 %v560_v15  ;;  %v685_v22 = vcvt.s32.f32 %v557_v16  ;;  %v689_v23 = vcvt.s32.f32 %v561_v17  ;;  %v2647_v30 = vld [vmem:[#allocation7 + $0xb0] sm:$0xff]  ;;  %v2646_v32 = vld [vmem:[#allocation7 + $0xa8] sm:$0xff]  ;;  %v2645_v44 = vld [vmem:[#allocation7 + $0xa0] sm:$0xff] }
  0x3e   : > { %v2655_v31 = vld [vmem:[#allocation7 + $0xf0] sm:$0xff]  ;;  %v2654_v33 = vld [vmem:[#allocation7 + $0xe8] sm:$0xff]  ;;  %v692_v38 = vcvt.s32.f32 %v564_v34  ;;  %v696_v39 = vcvt.s32.f32 %v568_v35  ;;  %v693_v40 = vcvt.s32.f32 %v565_v36  ;;  %v697_v41 = vcvt.s32.f32 %v569_v37  ;;  %v2653_v45 = vld [vmem:[#allocation7 + $0xe0] sm:$0xff] }
  0x3f   : > { %2850 = vmatpush.bf16.msra.mxu2 %v2630_v4  ;;  %1107 = vmatpush.bf16.msra.mxu0 %v2630_v4  ;;  %v780_v28 = vpack.c.bf16 %v688_v21, %v684_v20  ;;  %v781_v29 = vpack.c.bf16 %v689_v23, %v685_v22  ;;  %v480_v46 = vld [vmem:[%s3360_s22 + $0xa0] sm:$0xff]  ;;  %v481_v47 = vld [vmem:[%s3360_s22 + $0xa8] sm:$0xff]  ;;  %v2644_v58 = vld [vmem:[#allocation7 + $0x98] sm:$0xff] }
  0x40   : > { %2858 = vmatpush.bf16.msra.mxu3 %v2638_v5  ;;  %1196 = vmatpush.bf16.msra.mxu1 %v2638_v5  ;;  %v784_v42 = vpack.c.bf16 %v696_v39, %v692_v38  ;;  %v785_v43 = vpack.c.bf16 %v697_v41, %v693_v40  ;;  %v572_v48 = vunpack.c.0.s8 %v480_v46  ;;  %v576_v49 = vunpack.c.1.s8 %v480_v46  ;;  %v2652_v59 = vld [vmem:[#allocation7 + $0xd8] sm:$0xff]  ;;  %v2642_v20 = vld [vmem:[#allocation7 + $0x88] sm:$0xff]  ;;  %v2649_v34 = vld [vmem:[#allocation7 + $0xc0] sm:$0xff] }
  0x41   : > { %v573_v50 = vunpack.c.0.s8 %v481_v47  ;;  %v577_v51 = vunpack.c.1.s8 %v481_v47  ;;  %v580_v60 = vunpack.c.2.s8 %v480_v46  ;;  %v584_v61 = vunpack.c.3.s8 %v480_v46  ;;  %v2650_v21 = vld [vmem:[#allocation7 + $0xc8] sm:$0xff]  ;;  %v460_v35 = vld [vmem:[%s3360_s22] sm:$0xff] }
  0x42   : > { %v700_v52 = vcvt.s32.f32 %v572_v48  ;;  %v704_v53 = vcvt.s32.f32 %v576_v49  ;;  %v581_v62 = vunpack.c.2.s8 %v481_v47  ;;  %v585_v63 = vunpack.c.3.s8 %v481_v47  ;;  %v489_v36 = vld [vmem:[%s3360_s22 + $0xe8] sm:$0xff] }
  0x43   : > { %2851 = vmatpush.bf16.msra.mxu2 %v2629_v6  ;;  %1108 = vmatpush.bf16.msra.mxu0 %v2629_v6  ;;  %v701_v54 = vcvt.s32.f32 %v573_v50  ;;  %v705_v55 = vcvt.s32.f32 %v577_v51  ;;  %v708_v0 = vcvt.s32.f32 %v580_v60  ;;  %v712_v1 = vcvt.s32.f32 %v584_v61  ;;  %v2643_v6 = vld [vmem:[#allocation7 + $0x90] sm:$0xff]  ;;  %v461_v39 = vld [vmem:[%s3360_s22 + $0x8] sm:$0xff] }
  0x44   : > { %2859 = vmatpush.bf16.msra.mxu3 %v2637_v7  ;;  %1197 = vmatpush.bf16.msra.mxu1 %v2637_v7  ;;  %v788_v56 = vpack.c.bf16 %v704_v53, %v700_v52  ;;  %v709_v2 = vcvt.s32.f32 %v581_v62  ;;  %v713_v3 = vcvt.s32.f32 %v585_v63  ;;  %v2651_v7 = vld [vmem:[#allocation7 + $0xd0] sm:$0xff]  ;;  %v492_v37 = vunpack.c.0.s8 %v460_v35 }
  0x45   : > { %v789_v57 = vpack.c.bf16 %v705_v55, %v701_v54  ;;  %v792_v4 = vpack.c.bf16 %v712_v1, %v708_v0  ;;  %v496_v38 = vunpack.c.1.s8 %v460_v35  ;;  %v493_v40 = vunpack.c.0.s8 %v461_v39 }
  0x46   : > { %v793_v5 = vpack.c.bf16 %v713_v3, %v709_v2  ;;  %v497_v41 = vunpack.c.1.s8 %v461_v39  ;;  %v605_v46 = vunpack.c.0.s8 %v489_v36  ;;  %v609_v47 = vunpack.c.1.s8 %v489_v36 }
  0x47   : > { %2852 = vmatpush.bf16.msra.mxu2 %v2628_v8  ;;  %1109 = vmatpush.bf16.msra.mxu0 %v2628_v8  ;;  %v484_v8 = vld [vmem:[%s3360_s22 + $0xc0] sm:$0xff]  ;;  %v621_v48 = vcvt.s32.f32 %v493_v40  ;;  %v613_v60 = vunpack.c.2.s8 %v489_v36  ;;  %v617_v61 = vunpack.c.3.s8 %v489_v36  ;;  %v500_v62 = vunpack.c.2.s8 %v460_v35 }
  0x48   : > { %2860 = vmatpush.bf16.msra.mxu3 %v2636_v9  ;;  %1198 = vmatpush.bf16.msra.mxu1 %v2636_v9  ;;  %v485_v9 = vld [vmem:[%s3360_s22 + $0xc8] sm:$0xff]  ;;  %v596_v22 = vunpack.c.2.s8 %v484_v8  ;;  %v600_v23 = vunpack.c.3.s8 %v484_v8  ;;  %v625_v49 = vcvt.s32.f32 %v497_v41  ;;  %v733_v54 = vcvt.s32.f32 %v605_v46  ;;  %v2663_v46 = vld [vmem:[#allocation9 + $0x30] sm:$0xff] }
  0x49   : > { %v589_v12 = vunpack.c.0.s8 %v485_v9  ;;  %v593_v13 = vunpack.c.1.s8 %v485_v9  ;;  %v737_v55 = vcvt.s32.f32 %v609_v47  ;;  %v504_v63 = vunpack.c.3.s8 %v460_v35 }
  0x4a   : > { %v749_v51 = vpack.c.bf16 %v625_v49, %v621_v48  ;;  %v501_v0 = vunpack.c.2.s8 %v461_v39  ;;  %v505_v1 = vunpack.c.3.s8 %v461_v39 }
  0x4b   : > { %2853 = vmatpush.bf16.msra.mxu2 %v2627_v10  ;;  %1110 = vmatpush.bf16.msra.mxu0 %v2627_v10  ;;  %v588_v10 = vunpack.c.0.s8 %v484_v8  ;;  %v717_v16 = vcvt.s32.f32 %v589_v12  ;;  %v721_v17 = vcvt.s32.f32 %v593_v13 }
  0x4c   : > { %2861 = vmatpush.bf16.msra.mxu3 %v2635_v11  ;;  %1199 = vmatpush.bf16.msra.mxu1 %v2635_v11  ;;  %v592_v11 = vunpack.c.1.s8 %v484_v8  ;;  %v629_v8 = vcvt.s32.f32 %v501_v0 }
  0x4d   : > { %v716_v14 = vcvt.s32.f32 %v588_v10 }
  0x4e   : > { %v720_v15 = vcvt.s32.f32 %v592_v11 }
  0x4f   : > { %2854 = vmatpush.bf16.msra.mxu2 %v2626_v18  ;;  %1111 = vmatpush.bf16.msra.mxu0 %v2626_v18 }
  0x50   : > { %2862 = vmatpush.bf16.msra.mxu3 %v2634_v19  ;;  %1200 = vmatpush.bf16.msra.mxu1 %v2634_v19  ;;  %v796_v18 = vpack.c.bf16 %v720_v15, %v716_v14  ;;  %v797_v19 = vpack.c.bf16 %v721_v17, %v717_v16  ;;  %v462_v14 = vld [vmem:[%s3360_s22 + $0x10] sm:$0xff]  ;;  %v463_v15 = vld [vmem:[%s3360_s22 + $0x18] sm:$0xff] }
  0x51   : > { %v494_v16 = vunpack.c.0.s8 %v462_v14  ;;  %v498_v17 = vunpack.c.1.s8 %v462_v14  ;;  %v502_v41 = vunpack.c.2.s8 %v462_v14 }
  0x53   : > { %2855 = vmatpush.bf16.msra.mxu2 %v2625_v24  ;;  %1112 = vmatpush.bf16.msra.mxu0 %v2625_v24  ;;  %v597_v24 = vunpack.c.2.s8 %v485_v9 }
  0x54   : > { %2863 = vmatpush.bf16.msra.mxu3 %v2633_v25  ;;  %1201 = vmatpush.bf16.msra.mxu1 %v2633_v25  ;;  %v601_v25 = vunpack.c.3.s8 %v485_v9  ;;  %v633_v9 = vcvt.s32.f32 %v505_v1 }
  0x56   : > { %1153 = vmatmul.bf16.vlgmr.msra.gmra.mxu2 %v780_v28  ;;  %v725_v28 = vcvt.s32.f32 %v597_v24  ;;  %v753_v11 = vpack.c.bf16 %v633_v9, %v629_v8 }
  0x57   : > { %1283 = vmatpush.bf16.msrb.mxu2 %v2648_v26  ;;  %1242 = vmatmul.bf16.vlgmr.msra.gmra.mxu3 %v781_v29  ;;  %v724_v26 = vcvt.s32.f32 %v596_v22  ;;  %v729_v29 = vcvt.s32.f32 %v601_v25  ;;  %v465_v22 = vld [vmem:[%s3360_s22 + $0x28] sm:$0xff] }
  0x58   : > { %1372 = vmatpush.bf16.msrb.mxu3 %v2656_v27  ;;  %v728_v27 = vcvt.s32.f32 %v600_v23  ;;  %1202 = vmatmul.bf16.vlgmr.msra.gmra.mxu1 %v749_v51  ;;  %v509_v25 = vunpack.c.0.s8 %v465_v22  ;;  %v517_v49 = vunpack.c.2.s8 %v465_v22  ;;  %v630_v51 = vcvt.s32.f32 %v502_v41 }
  0x5b   : > { %1284 = vmatpush.bf16.msrb.mxu2 %v2647_v30  ;;  %v800_v30 = vpack.c.bf16 %v728_v27, %v724_v26  ;;  %v513_v26 = vunpack.c.1.s8 %v465_v22  ;;  %v622_v27 = vcvt.s32.f32 %v494_v16 }
  0x5c   : > { %1373 = vmatpush.bf16.msrb.mxu3 %v2655_v31  ;;  %v801_v31 = vpack.c.bf16 %v729_v29, %v725_v28  ;;  %v626_v28 = vcvt.s32.f32 %v498_v17 }
  0x5f   : > { %1285 = vmatpush.bf16.msrb.mxu2 %v2646_v32  ;;  %v488_v32 = vld [vmem:[%s3360_s22 + $0xe0] sm:$0xff] }
  0x60   : > { %1374 = vmatpush.bf16.msrb.mxu3 %v2654_v33  ;;  %v2641_v33 = vld [vmem:[#allocation7 + $0x80] sm:$0xff] }
  0x63   : > { %1286 = vmatpush.bf16.msrb.mxu2 %v2645_v44  ;;  %v620_v44 = vcvt.s32.f32 %v492_v37  ;;  %v750_v37 = vpack.c.bf16 %v626_v28, %v622_v27 }
  0x64   : > { %1375 = vmatpush.bf16.msrb.mxu3 %v2653_v45  ;;  %v624_v45 = vcvt.s32.f32 %v496_v38 }
  0x66   : > { %1158 = vmatmul.bf16.gmra.mxu2 %v784_v42  ;;  %v604_v42 = vunpack.c.0.s8 %v488_v32  ;;  %v748_v50 = vpack.c.bf16 %v624_v45, %v620_v44  ;;  %v507_v44 = vunpack.c.3.s8 %v463_v15 }
  0x67   : > { %1247 = vmatmul.bf16.gmra.mxu3 %v785_v43  ;;  %1287 = vmatpush.bf16.msrb.mxu2 %v2644_v58  ;;  %v608_v43 = vunpack.c.1.s8 %v488_v32  ;;  %v612_v58 = vunpack.c.2.s8 %v488_v32 }
  0x68   : > { %1376 = vmatpush.bf16.msrb.mxu3 %v2652_v59  ;;  %1113 = vmatmul.bf16.vlgmr.msra.gmra.mxu0 %v748_v50  ;;  %v732_v52 = vcvt.s32.f32 %v604_v42  ;;  %v616_v59 = vunpack.c.3.s8 %v488_v32  ;;  %v506_v42 = vunpack.c.3.s8 %v462_v14  ;;  %v521_v50 = vunpack.c.3.s8 %v465_v22 }
  0x69   : > { %v736_v53 = vcvt.s32.f32 %v608_v43  ;;  %v740_v2 = vcvt.s32.f32 %v612_v58  ;;  %1207 = vmatmul.bf16.gmra.mxu1 %v753_v11  ;;  %v503_v43 = vunpack.c.2.s8 %v463_v15  ;;  %v2662_v11 = vld [vmem:[#allocation9 + $0x28] sm:$0xff] }
  0x6a   : > { %v744_v3 = vcvt.s32.f32 %v616_v59  ;;  %v649_v58 = vcvt.s32.f32 %v521_v50 }
  0x6b   : > { %1288 = vmatpush.bf16.msrb.mxu2 %v2643_v6  ;;  %v628_v6 = vcvt.s32.f32 %v500_v62 }
  0x6c   : > { %1377 = vmatpush.bf16.msrb.mxu3 %v2651_v7  ;;  %v632_v7 = vcvt.s32.f32 %v504_v63  ;;  %v808_v12 = vpack.c.bf16 %v744_v3, %v740_v2  ;;  %v466_v2 = vld [vmem:[%s3360_s22 + $0x30] sm:$0xff]  ;;  %v467_v3 = vld [vmem:[%s3360_s22 + $0x38] sm:$0xff] }
  0x6d   : > { %v511_v8 = vunpack.c.0.s8 %v467_v3  ;;  %v515_v9 = vunpack.c.1.s8 %v467_v3 }
  0x6e   : > { %v752_v10 = vpack.c.bf16 %v632_v7, %v628_v6  ;;  %v510_v6 = vunpack.c.0.s8 %v466_v2  ;;  %v514_v7 = vunpack.c.1.s8 %v466_v2 }
  0x6f   : > { %1289 = vmatpush.bf16.msrb.mxu2 %v2642_v20  ;;  %v2664_v20 = vld [vmem:[#allocation9 + $0x38] sm:$0xff] }
  0x70   : > { %1378 = vmatpush.bf16.msrb.mxu3 %v2650_v21  ;;  %v464_v21 = vld [vmem:[%s3360_s22 + $0x20] sm:$0xff]  ;;  %1780 = vmatpush.bf16.msrb.mxu0 %v2664_v20  ;;  %v639_v20 = vcvt.s32.f32 %v511_v8 }
  0x71   : > { %v508_v23 = vunpack.c.0.s8 %v464_v21  ;;  %v512_v24 = vunpack.c.1.s8 %v464_v21  ;;  %v516_v47 = vunpack.c.2.s8 %v464_v21  ;;  %v520_v48 = vunpack.c.3.s8 %v464_v21  ;;  %v472_v8 = vld [vmem:[%s3360_s22 + $0x60] sm:$0xff] }
  0x72   : > { %v643_v21 = vcvt.s32.f32 %v515_v9  ;;  %v473_v9 = vld [vmem:[%s3360_s22 + $0x68] sm:$0xff] }
  0x73   : > { %1290 = vmatpush.bf16.msrb.mxu2 %v2641_v33  ;;  %v640_v32 = vcvt.s32.f32 %v512_v24  ;;  %v637_v33 = vcvt.s32.f32 %v509_v25 }
  0x74   : > { %1379 = vmatpush.bf16.msrb.mxu3 %v2649_v34  ;;  %v641_v34 = vcvt.s32.f32 %v513_v26  ;;  %1781 = vmatpush.bf16.msrb.mxu0 %v2663_v46 }
  0x76   : > { %1163 = vmatmul.bf16.gmra.mxu2 %v788_v56  ;;  %v804_v56 = vpack.c.bf16 %v736_v53, %v732_v52  ;;  %v757_v36 = vpack.c.bf16 %v641_v34, %v637_v33  ;;  %v634_v52 = vcvt.s32.f32 %v506_v42  ;;  %v631_v53 = vcvt.s32.f32 %v503_v43 }
  0x77   : > { %1252 = vmatmul.bf16.gmra.mxu3 %v789_v57  ;;  %v805_v57 = vpack.c.bf16 %v737_v55, %v733_v54  ;;  %v635_v54 = vcvt.s32.f32 %v507_v44  ;;  %v644_v55 = vcvt.s32.f32 %v516_v47 }
  0x78   : > { %1118 = vmatmul.bf16.gmra.mxu0 %v752_v10  ;;  %v754_v0 = vpack.c.bf16 %v634_v52, %v630_v51 }
  0x79   : > { %1212 = vmatmul.bf16.gmra.mxu1 %v757_v36  ;;  %v755_v1 = vpack.c.bf16 %v635_v54, %v631_v53  ;;  %1782 = vmatpush.bf16.msrb.mxu0 %v2662_v11  ;;  %v522_v36 = vunpack.c.3.s8 %v466_v2  ;;  %v540_v11 = vunpack.c.0.s8 %v472_v8 }
  0x7b   : > { %v650_v47 = vcvt.s32.f32 %v522_v36 }
  0x86   : > { %1168 = vmatmul.bf16.gmra.mxu2 %v792_v4  ;;  %v741_v4 = vcvt.s32.f32 %v613_v60 }
  0x87   : > { %1257 = vmatmul.bf16.gmra.mxu3 %v793_v5  ;;  %v745_v5 = vcvt.s32.f32 %v617_v61 }
  0x89   : > { %v809_v13 = vpack.c.bf16 %v745_v5, %v741_v4 }
  0x96   : > { %1173 = vmatmul.bf16.gmra.mxu2 %v796_v18  ;;  %v495_v18 = vunpack.c.0.s8 %v463_v15 }
  0x97   : > { %1262 = vmatmul.bf16.gmra.mxu3 %v797_v19  ;;  %v499_v19 = vunpack.c.1.s8 %v463_v15 }
  0x98   : > { %v623_v29 = vcvt.s32.f32 %v495_v18  ;;  %v638_v18 = vcvt.s32.f32 %v510_v6 }
  0xa6   : > { %1178 = vmatmul.bf16.gmra.mxu2 %v800_v30  ;;  %v627_v30 = vcvt.s32.f32 %v499_v19  ;;  %v642_v19 = vcvt.s32.f32 %v514_v7  ;;  %v2660_v7 = vld [vmem:[#allocation9 + $0x18] sm:$0xff] }
  0xa7   : > { %1267 = vmatmul.bf16.gmra.mxu3 %v801_v31  ;;  %v636_v31 = vcvt.s32.f32 %v508_v23 }
  0xa8   : > { %v751_v38 = vpack.c.bf16 %v627_v30, %v623_v29 }
  0xa9   : > { %v756_v35 = vpack.c.bf16 %v640_v32, %v636_v31  ;;  %v758_v31 = vpack.c.bf16 %v642_v19, %v638_v18  ;;  %v759_v32 = vpack.c.bf16 %v643_v21, %v639_v20  ;;  %v668_v19 = vcvt.s32.f32 %v540_v11 }
  0xab   : > { %1123 = vmatmul.bf16.gmra.mxu0 %v756_v35  ;;  %v518_v35 = vunpack.c.2.s8 %v466_v2 }
  0xad   : > { %v646_v46 = vcvt.s32.f32 %v518_v35 }
  0xb6   : > { %1183 = vmatmul.bf16.gmra.mxu2 %v804_v56  ;;  %v648_v56 = vcvt.s32.f32 %v520_v48 }
  0xb7   : > { %1272 = vmatmul.bf16.gmra.mxu3 %v805_v57  ;;  %v645_v57 = vcvt.s32.f32 %v517_v49 }
  0xb8   : > { %v760_v59 = vpack.c.bf16 %v648_v56, %v644_v55 }
  0xb9   : > { %v761_v60 = vpack.c.bf16 %v649_v58, %v645_v57 }
  0xbb   : > { %1128 = vmatmul.bf16.gmra.mxu0 %v760_v59  ;;  %1217 = vmatmul.bf16.gmra.mxu1 %v761_v60  ;;  %v762_v59 = vpack.c.bf16 %v650_v47, %v646_v46 }
  0xc6   : > { %1188 = vmatmul.bf16.gmra.mxu2 %v808_v12  ;;  %v468_v12 = vld [vmem:[%s3360_s22 + $0x40] sm:$0xff] }
  0xc7   : > { %1277 = vmatmul.bf16.gmra.mxu3 %v809_v13  ;;  %v469_v13 = vld [vmem:[%s3360_s22 + $0x48] sm:$0xff]  ;;  %v524_v14 = vunpack.c.0.s8 %v468_v12  ;;  %v528_v15 = vunpack.c.1.s8 %v468_v12  ;;  %v532_v41 = vunpack.c.2.s8 %v468_v12  ;;  %v536_v42 = vunpack.c.3.s8 %v468_v12 }
  0xc8   : > { %v525_v16 = vunpack.c.0.s8 %v469_v13  ;;  %v529_v17 = vunpack.c.1.s8 %v469_v13  ;;  %v533_v43 = vunpack.c.2.s8 %v469_v13  ;;  %v537_v44 = vunpack.c.3.s8 %v469_v13 }
  0xc9   : > { %v652_v22 = vcvt.s32.f32 %v524_v14  ;;  %v656_v23 = vcvt.s32.f32 %v528_v15  ;;  %v660_v50 = vcvt.s32.f32 %v532_v41  ;;  %v664_v51 = vcvt.s32.f32 %v536_v42 }
  0xca   : > { %v653_v24 = vcvt.s32.f32 %v525_v16  ;;  %v657_v25 = vcvt.s32.f32 %v529_v17  ;;  %v661_v52 = vcvt.s32.f32 %v533_v43  ;;  %v665_v53 = vcvt.s32.f32 %v537_v44 }
  0xcb   : > { %v764_v26 = vpack.c.bf16 %v656_v23, %v652_v22  ;;  %v768_v54 = vpack.c.bf16 %v664_v51, %v660_v50  ;;  %v544_v12 = vunpack.c.1.s8 %v472_v8  ;;  %v541_v13 = vunpack.c.0.s8 %v473_v9 }
  0xcc   : > { %v765_v27 = vpack.c.bf16 %v657_v25, %v653_v24  ;;  %v769_v55 = vpack.c.bf16 %v665_v53, %v661_v52  ;;  %v545_v14 = vunpack.c.1.s8 %v473_v9  ;;  %v552_v41 = vunpack.c.3.s8 %v472_v8 }
  0xcd   : > { %1133 = vmatmul.bf16.gmra.mxu0 %v764_v26  ;;  %v672_v20 = vcvt.s32.f32 %v544_v12  ;;  %v669_v21 = vcvt.s32.f32 %v541_v13  ;;  %v549_v42 = vunpack.c.2.s8 %v473_v9  ;;  %v553_v43 = vunpack.c.3.s8 %v473_v9 }
  0xce   : > { %1222 = vmatmul.bf16.gmra.mxu1 %v765_v27  ;;  %v673_v22 = vcvt.s32.f32 %v545_v14  ;;  %v680_v50 = vcvt.s32.f32 %v552_v41 }
  0xcf   : > { %v772_v23 = vpack.c.bf16 %v672_v20, %v668_v19  ;;  %v677_v51 = vcvt.s32.f32 %v549_v42  ;;  %v681_v52 = vcvt.s32.f32 %v553_v43 }
  0xd0   : > { %v773_v24 = vpack.c.bf16 %v673_v22, %v669_v21 }
  0xd5   : > { %v1203_v20 = vpop.f32.mrf.mxu1 }
  0xd6   : > { %1291 = vmatmul.bf16.vlgmr.msrb.gmra.mxu2 %v750_v37  ;;  %v519_v37 = vunpack.c.2.s8 %v467_v3 }
  0xd7   : > { %1380 = vmatmul.bf16.vlgmr.msrb.gmra.mxu3 %v751_v38  ;;  %v523_v38 = vunpack.c.3.s8 %v467_v3 }
  0xd8   : > { %v647_v48 = vcvt.s32.f32 %v519_v37 }
  0xd9   : > { %v1154_v39 = vpop.f32.mrf.mxu2  ;;  %v651_v49 = vcvt.s32.f32 %v523_v38  ;;  %v2659_v38 = vld [vmem:[#allocation9 + $0x10] sm:$0xff] }
  0xda   : > { %v1243_v40 = vpop.f32.mrf.mxu3 }
  0xdb   : > { %v3388_v45 = vadd.f32 %v1243_v40, %v1154_v39  ;;  %v2661_v40 = vld [vmem:[#allocation9 + $0x20] sm:$0xff]  ;;  %v763_v60 = vpack.c.bf16 %v651_v49, %v647_v48 }
  0xdc   : > { %1783 = vmatpush.bf16.msrb.mxu0 %v2661_v40  ;;  %v548_v40 = vunpack.c.2.s8 %v472_v8  ;;  %v2658_v8 = vld [vmem:[#allocation9 + $0x8] sm:$0xff] }
  0xdd   : > { %1138 = vmatmul.bf16.gmra.mxu0 %v768_v54  ;;  %v777_v54 = vpack.c.bf16 %v681_v52, %v677_v51 }
  0xde   : > { %1227 = vmatmul.bf16.gmra.mxu1 %v769_v55  ;;  %v676_v49 = vcvt.s32.f32 %v548_v40 }
  0xe0   : > { %1784 = vmatpush.bf16.msrb.mxu0 %v2660_v7  ;;  %v776_v53 = vpack.c.bf16 %v680_v50, %v676_v49 }
  0xe1   : > { %v1156_v61 = vpop.f32.mrf.mxu2 }
  0xe2   : > { %v1245_v62 = vpop.f32.mrf.mxu3 }
  0xe3   : > { %v3390_v63 = vadd.f32 %v1245_v62, %v1156_v61  ;;  %v470_v61 = vld [vmem:[%s3360_s22 + $0x50] sm:$0xff]  ;;  %v471_v62 = vld [vmem:[%s3360_s22 + $0x58] sm:$0xff] }
  0xe4   : > { %v526_v2 = vunpack.c.0.s8 %v470_v61  ;;  %v530_v3 = vunpack.c.1.s8 %v470_v61  ;;  %v535_v35 = vunpack.c.2.s8 %v471_v62  ;;  %v539_v36 = vunpack.c.3.s8 %v471_v62  ;;  %1785 = vmatpush.bf16.msrb.mxu0 %v2659_v38 }
  0xe5   : > { %v1114_v19 = vpop.f32.mrf.mxu0 }
  0xe6   : > { %1296 = vmatmul.bf16.gmra.mxu2 %v754_v0  ;;  %v654_v15 = vcvt.s32.f32 %v526_v2  ;;  %v658_v16 = vcvt.s32.f32 %v530_v3  ;;  %v663_v47 = vcvt.s32.f32 %v535_v35  ;;  %v667_v48 = vcvt.s32.f32 %v539_v36  ;;  %v1205_v36 = vpop.f32.mrf.mxu1 }
  0xe7   : > { %1385 = vmatmul.bf16.gmra.mxu3 %v755_v1 }
  0xe8   : > { %1786 = vmatpush.bf16.msrb.mxu0 %v2658_v8  ;;  %v2672_v8 = vld [vmem:[#allocation10 + $0x38] sm:$0xff] }
  0xe9   : > { %v1159_v4 = vpop.f32.mrf.mxu2  ;;  %1985 = vmatpush.bf16.msrb.mxu1 %v2672_v8 }
  0xea   : > { %v1248_v5 = vpop.f32.mrf.mxu3 }
  0xeb   : > { %v3394_v10 = vadd.f32 %v1248_v5, %v1159_v4  ;;  %v527_v4 = vunpack.c.0.s8 %v471_v62  ;;  %v531_v5 = vunpack.c.1.s8 %v471_v62  ;;  %v475_v62 = vld [vmem:[%s3360_s22 + $0x78] sm:$0xff] }
  0xec   : > { %v547_v7 = vunpack.c.1.s8 %v475_v62 }
  0xed   : > { %v655_v17 = vcvt.s32.f32 %v527_v4  ;;  %v659_v18 = vcvt.s32.f32 %v531_v5  ;;  %1143 = vmatmul.bf16.gmra.mxu0 %v772_v23  ;;  %v543_v5 = vunpack.c.0.s8 %v475_v62  ;;  %v1116_v35 = vpop.f32.mrf.mxu0 }
  0xee   : > { %1232 = vmatmul.bf16.gmra.mxu1 %v773_v24  ;;  %v675_v13 = vcvt.s32.f32 %v547_v7 }
  0xef   : > { %v671_v12 = vcvt.s32.f32 %v543_v5 }
  0xf1   : > { %v1161_v28 = vpop.f32.mrf.mxu2 }
  0xf2   : > { %v1250_v29 = vpop.f32.mrf.mxu3 }
  0xf3   : > { %v3398_v30 = vadd.f32 %v1250_v29, %v1161_v28  ;;  %v766_v28 = vpack.c.bf16 %v658_v16, %v654_v15  ;;  %v767_v29 = vpack.c.bf16 %v659_v18, %v655_v17  ;;  %v775_v18 = vpack.c.bf16 %v675_v13, %v671_v12 }
  0xf4   : > { %v1204_v13 = vadd.f32 %v1203_v20, %v1114_v19  ;;  %v1206_v19 = vadd.f32 %v1205_v36, %v1116_v35  ;;  %v483_v35 = vld [vmem:[%s3360_s22 + $0xb8] sm:$0xff] }
  0xf5   : > { %v579_v8 = vunpack.c.1.s8 %v483_v35 }
  0xf6   : > { %1301 = vmatmul.bf16.gmra.mxu2 %v758_v31 }
  0xf7   : > { %1390 = vmatmul.bf16.gmra.mxu3 %v759_v32 }
  0xf9   : > { %v1164_v33 = vpop.f32.mrf.mxu2 }
  0xfa   : > { %v1253_v34 = vpop.f32.mrf.mxu3 }
  0xfb   : > { %v3400_v39 = vadd.f32 %v1253_v34, %v1164_v33  ;;  %v534_v33 = vunpack.c.2.s8 %v470_v61  ;;  %v538_v34 = vunpack.c.3.s8 %v470_v61  ;;  %v474_v61 = vld [vmem:[%s3360_s22 + $0x70] sm:$0xff] }
  0xfc   : > { %v542_v2 = vunpack.c.0.s8 %v474_v61  ;;  %v546_v4 = vunpack.c.1.s8 %v474_v61  ;;  %v550_v23 = vunpack.c.2.s8 %v474_v61 }
  0xfd   : > { %v662_v44 = vcvt.s32.f32 %v534_v33  ;;  %v666_v46 = vcvt.s32.f32 %v538_v34  ;;  %1148 = vmatmul.bf16.gmra.mxu0 %v776_v53  ;;  %v2657_v34 = vld [vmem:[#allocation9] sm:$0xff] }
  0xfe   : > { %1237 = vmatmul.bf16.gmra.mxu1 %v777_v54  ;;  %v670_v9 = vcvt.s32.f32 %v542_v2  ;;  %v674_v11 = vcvt.s32.f32 %v546_v4  ;;  %1787 = vmatpush.bf16.msrb.mxu0 %v2657_v34  ;;  %v3430_v54 = vpop.f32.mrf.mxu0 }
 0x100   : > { %v774_v17 = vpack.c.bf16 %v674_v11, %v670_v9 }
 0x101   : > { %v1166_v56 = vpop.f32.mrf.mxu2 }
 0x102   : > { %v1255_v57 = vpop.f32.mrf.mxu3 }
 0x103   : > { %v3402_v58 = vadd.f32 %v1255_v57, %v1166_v56 }
 0x106   : > { %1306 = vmatmul.bf16.gmra.mxu2 %v762_v59  ;;  %v770_v59 = vpack.c.bf16 %v666_v46, %v662_v44  ;;  %v478_v44 = vld [vmem:[%s3360_s22 + $0x90] sm:$0xff]  ;;  %v479_v46 = vld [vmem:[%s3360_s22 + $0x98] sm:$0xff]  ;;  %v3437_v5 = vpop.f32.mrf.mxu0 }
 0x107   : > { %1395 = vmatmul.bf16.gmra.mxu3 %v763_v60  ;;  %v771_v60 = vpack.c.bf16 %v667_v48, %v663_v47  ;;  %v558_v49 = vunpack.c.0.s8 %v478_v44  ;;  %v562_v51 = vunpack.c.1.s8 %v478_v44  ;;  %v559_v52 = vunpack.c.0.s8 %v479_v46 }
 0x108   : > { %v563_v53 = vunpack.c.1.s8 %v479_v46  ;;  %v566_v12 = vunpack.c.2.s8 %v478_v44 }
 0x109   : > { %v1169_v0 = vpop.f32.mrf.mxu2 }
 0x10a   : > { %v1258_v1 = vpop.f32.mrf.mxu3 }
 0x10b   : > { %v3406_v6 = vadd.f32 %v1258_v1, %v1169_v0 }
 0x111   : > { %v1171_v25 = vpop.f32.mrf.mxu2 }
 0x112   : > { %v1260_v26 = vpop.f32.mrf.mxu3 }
 0x113   : > { %v3410_v27 = vadd.f32 %v1260_v26, %v1171_v25  ;;  %v554_v25 = vunpack.c.3.s8 %v474_v61  ;;  %v551_v26 = vunpack.c.2.s8 %v475_v62  ;;  %v691_v61 = vcvt.s32.f32 %v563_v53 }
 0x116   : > { %1311 = vmatmul.bf16.gmra.mxu2 %v766_v28  ;;  %v555_v28 = vunpack.c.3.s8 %v475_v62 }
 0x117   : > { %1400 = vmatmul.bf16.gmra.mxu3 %v767_v29  ;;  %v678_v29 = vcvt.s32.f32 %v550_v23 }
 0x118   : > { %v683_v33 = vcvt.s32.f32 %v555_v28 }
 0x119   : > { %v1174_v31 = vpop.f32.mrf.mxu2 }
 0x11a   : > { %v1263_v32 = vpop.f32.mrf.mxu3 }
 0x11b   : > { %v3412_v37 = vadd.f32 %v1263_v32, %v1174_v31  ;;  %v682_v31 = vcvt.s32.f32 %v554_v25  ;;  %v679_v32 = vcvt.s32.f32 %v551_v26  ;;  %v694_v25 = vcvt.s32.f32 %v566_v12 }
 0x11d   : > { %v778_v42 = vpack.c.bf16 %v682_v31, %v678_v29  ;;  %v779_v43 = vpack.c.bf16 %v683_v33, %v679_v32 }
 0x121   : > { %v1176_v55 = vpop.f32.mrf.mxu2 }
 0x122   : > { %v1265_v56 = vpop.f32.mrf.mxu3 }
 0x123   : > { %v3414_v57 = vadd.f32 %v1265_v56, %v1176_v55  ;;  %v3432_v55 = vpop.f32.mrf.mxu1  ;;  %v686_v56 = vcvt.s32.f32 %v558_v49 }
 0x126   : > { %1316 = vmatmul.bf16.gmra.mxu2 %v770_v59  ;;  %v690_v59 = vcvt.s32.f32 %v562_v51  ;;  %v482_v51 = vld [vmem:[%s3360_s22 + $0xb0] sm:$0xff] }
 0x127   : > { %1405 = vmatmul.bf16.gmra.mxu3 %v771_v60  ;;  %v687_v60 = vcvt.s32.f32 %v559_v52  ;;  %v2671_v52 = vld [vmem:[#allocation10 + $0x30] sm:$0xff] }
 0x128   : > { %v782_v2 = vpack.c.bf16 %v690_v59, %v686_v56  ;;  %v1124_v32 = vpop.f32.mrf.mxu0  ;;  %1986 = vmatpush.bf16.msrb.mxu1 %v2671_v52 }
 0x129   : > { %v1179_v0 = vpop.f32.mrf.mxu2  ;;  %v783_v4 = vpack.c.bf16 %v691_v61, %v687_v60  ;;  %v574_v61 = vunpack.c.0.s8 %v482_v51 }
 0x12a   : > { %v1268_v1 = vpop.f32.mrf.mxu3 }
 0x12b   : > { %v3418_v3 = vadd.f32 %v1268_v1, %v1179_v0  ;;  %v1210_v7 = vpop.f32.mrf.mxu1 }
 0x130   : > { %v1126_v53 = vpop.f32.mrf.mxu0 }
 0x131   : > { %v1181_v14 = vpop.f32.mrf.mxu2 }
 0x132   : > { %v1270_v15 = vpop.f32.mrf.mxu3 }
 0x133   : > { %v3420_v16 = vadd.f32 %v1270_v15, %v1181_v14  ;;  %v2675_v14 = vld [vmem:[%s3439_s25] sm:$0xff]   ;;  %v570_v15 = vunpack.c.3.s8 %v478_v44  ;;  %v1213_v33 = vpop.f32.mrf.mxu1 }
 0x134   : > { %v2677_v23 = vunpack.c.h.bf16 %v2675_v14 }
 0x135   : > { %v698_v28 = vcvt.s32.f32 %v570_v15  ;;  %v707_v15 = vcvt.s32.f32 %v579_v8 }
 0x136   : > { %1321 = vmatmul.bf16.gmra.mxu2 %v774_v17  ;;  %v567_v17 = vunpack.c.2.s8 %v479_v46 }
 0x137   : > { %1410 = vmatmul.bf16.gmra.mxu3 %v775_v18  ;;  %v571_v18 = vunpack.c.3.s8 %v479_v46  ;;  %v786_v44 = vpack.c.bf16 %v698_v28, %v694_v25 }
 0x138   : > { %v695_v29 = vcvt.s32.f32 %v567_v17 }
 0x139   : > { %v1184_v21 = vpop.f32.mrf.mxu2  ;;  %v699_v31 = vcvt.s32.f32 %v571_v18  ;;  %v1211_v18 = vadd.f32 %v1210_v7, %v3437_v5 }
 0x13a   : > { %v1273_v22 = vpop.f32.mrf.mxu3 }
 0x13b   : > { %v3422_v24 = vadd.f32 %v1273_v22, %v1184_v21  ;;  %v2676_v21 = vunpack.c.l.bf16 %v2675_v14  ;;  %v3442_v22 = vstv %s1630_s20  ;;  %v787_v46 = vpack.c.bf16 %v699_v31, %v695_v29  ;;  %v1215_v56 = vpop.f32.mrf.mxu1  ;;  %v1129_v31 = vpop.f32.mrf.mxu0 }
 0x13c   : > { %v1216_v8 = vadd.f32 %v1215_v56, %v1126_v53  ;;  %v486_v56 = vld [vmem:[%s3360_s22 + $0xd0] sm:$0xff] }
 0x13d   : > { %v1632_v20 = vmul.f32 %v2676_v21, %v3442_v22 }
 0x141   : > { %v1186_v38 = vpop.f32.mrf.mxu2 }
 0x142   : > { %v1275_v40 = vpop.f32.mrf.mxu3 }
 0x143   : > { %v3424_v41 = vadd.f32 %v1275_v40, %v1186_v38  ;;  %v1633_v40 = vmul.f32 %v2677_v23, %v3442_v22  ;;  %v1131_v52 = vpop.f32.mrf.mxu0 }
 0x146   : > { %1326 = vmatmul.bf16.gmra.mxu2 %v778_v42 }
 0x147   : > { %1415 = vmatmul.bf16.gmra.mxu3 %v779_v43 }
 0x149   : > { %v1189_v47 = vpop.f32.mrf.mxu2 }
 0x14a   : > { %v1278_v48 = vpop.f32.mrf.mxu3 }
 0x14b   : > { %v3428_v50 = vadd.f32 %v1278_v48, %v1189_v47 }
 0x151   : > { %v1191_v62 = vpop.f32.mrf.mxu2 }
 0x152   : > { %v1280_v0 = vpop.f32.mrf.mxu3 }
 0x153   : > { %v3435_v1 = vadd.f32 %v1280_v0, %v1191_v62  ;;  %v578_v62 = vunpack.c.1.s8 %v482_v51  ;;  %v1209_v0 = vadd.f32 %v3432_v55, %v3430_v54 }
 0x155   : > { %v706_v12 = vcvt.s32.f32 %v578_v62 }
 0x156   : > { %1331 = vmatmul.bf16.gmra.mxu2 %v782_v2  ;;  %v2818_v2 = vld [vmem:[%s3439_s25 + $0x8] sm:$0xff]  }
 0x157   : > { %1420 = vmatmul.bf16.gmra.mxu3 %v783_v4  ;;  %v575_v4 = vunpack.c.0.s8 %v483_v35  ;;  %v2681_v17 = vunpack.c.h.bf16 %v2818_v2 }
 0x159   : > { %v1292_v9 = vpop.f32.mrf.mxu2  ;;  %v703_v14 = vcvt.s32.f32 %v575_v4  ;;  %v1635_v29 = vmul.f32 %v2681_v17, %v3442_v22 }
 0x15a   : > { %v1381_v11 = vpop.f32.mrf.mxu3  ;;  %v1293_v26 = vadd.f32 %v1292_v9, %v1204_v13  ;;  %v2680_v9 = vunpack.c.l.bf16 %v2818_v2 }
 0x15b   : > { %v791_v55 = vpack.c.bf16 %v707_v15, %v703_v14 }
 0x15c   : > { %v1382_v42 = vadd.f32 %v1381_v11, %v1293_v26  ;;  %v702_v11 = vcvt.s32.f32 %v574_v61  ;;  %v1634_v21 = vmul.f32 %v2680_v9, %v3442_v22 }
 0x15e   : > { %v1664_v48 = vadd.f32 %v1632_v20, %v1382_v42  ;;  %v790_v26 = vpack.c.bf16 %v706_v12, %v702_v11 }
 0x161   : > { %v1294_v34 = vpop.f32.mrf.mxu2 }
 0x162   : > { %v1383_v38 = vpop.f32.mrf.mxu3  ;;  %v1295_v43 = vadd.f32 %v1294_v34, %v1206_v19  ;;  %v1218_v19 = vpop.f32.mrf.mxu1 }
 0x164   : > { %v1384_v47 = vadd.f32 %v1383_v38, %v1295_v43  ;;  %v582_v43 = vunpack.c.2.s8 %v482_v51 }
 0x166   : > { %v1665_v49 = vadd.f32 %v1633_v40, %v1384_v47  ;;  %1336 = vmatmul.bf16.gmra.mxu2 %v786_v44  ;;  %v2670_v40 = vld [vmem:[#allocation10 + $0x28] sm:$0xff]  ;;  %v586_v44 = vunpack.c.3.s8 %v482_v51  ;;  %v2819_v47 = vld [vmem:[%s3439_s25 + $0x10] sm:$0xff]  }
 0x167   : > { %1425 = vmatmul.bf16.gmra.mxu3 %v787_v46  ;;  %1987 = vmatpush.bf16.msrb.mxu1 %v2670_v40  ;;  %v1214_v46 = vadd.f32 %v1213_v33, %v1124_v32  ;;  %v2685_v4 = vunpack.c.h.bf16 %v2819_v47 }
 0x168   : > { %v1696_v36 = vpack.c.bf16 %v1665_v49, %v1664_v48  ;;  %v583_v48 = vunpack.c.2.s8 %v483_v35  ;;  %v587_v49 = vunpack.c.3.s8 %v483_v35  ;;  %v714_v61 = vcvt.s32.f32 %v586_v44 }
 0x169   : > { %v1297_v59 = vpop.f32.mrf.mxu2 }
 0x16a   : > { %v1386_v60 = vpop.f32.mrf.mxu3  ;;  %1788 = vmatmul.bf16.vlgmr.msrb.gmra.mxu0 %v1696_v36  ;;  %v1298_v13 = vadd.f32 %v1297_v59, %v1209_v0  ;;  %v1220_v36 = vpop.f32.mrf.mxu1  ;;  %v2684_v59 = vunpack.c.l.bf16 %v2819_v47  ;;  %v711_v0 = vcvt.s32.f32 %v583_v48  ;;  %v715_v2 = vcvt.s32.f32 %v587_v49 }
 0x16b   : > { %v1221_v47 = vadd.f32 %v1220_v36, %v1131_v52 }
 0x16c   : > { %v1387_v28 = vadd.f32 %v1386_v60, %v1298_v13  ;;  %v710_v60 = vcvt.s32.f32 %v582_v43  ;;  %v1636_v9 = vmul.f32 %v2684_v59, %v3442_v22  ;;  %v795_v35 = vpack.c.bf16 %v715_v2, %v711_v0 }
 0x16d   : > { %v1637_v13 = vmul.f32 %v2685_v4, %v3442_v22 }
 0x16e   : > { %v1666_v34 = vadd.f32 %v1634_v21, %v1387_v28  ;;  %v794_v33 = vpack.c.bf16 %v714_v61, %v710_v60  ;;  %v2669_v21 = vld [vmem:[#allocation10 + $0x20] sm:$0xff] }
 0x16f   : > { %1988 = vmatpush.bf16.msrb.mxu1 %v2669_v21 }
 0x171   : > { %v1299_v23 = vpop.f32.mrf.mxu2 }
 0x172   : > { %v1388_v25 = vpop.f32.mrf.mxu3  ;;  %v1300_v54 = vadd.f32 %v1299_v23, %v1211_v18  ;;  %v1134_v18 = vpop.f32.mrf.mxu0  ;;  %v487_v23 = vld [vmem:[%s3360_s22 + $0xd8] sm:$0xff] }
 0x173   : > { %v1223_v53 = vpop.f32.mrf.mxu1 }
 0x174   : > { %v1389_v20 = vadd.f32 %v1388_v25, %v1300_v54  ;;  %v590_v54 = vunpack.c.0.s8 %v486_v56 }
 0x176   : > { %1341 = vmatmul.bf16.gmra.mxu2 %v790_v26  ;;  %v1667_v38 = vadd.f32 %v1635_v29, %v1389_v20  ;;  %v1219_v29 = vadd.f32 %v1218_v19, %v1129_v31  ;;  %v2820_v20 = vld [vmem:[%s3439_s25 + $0x18] sm:$0xff]  }
 0x177   : > { %1430 = vmatmul.bf16.gmra.mxu3 %v791_v55  ;;  %v594_v55 = vunpack.c.1.s8 %v486_v56  ;;  %v2688_v40 = vunpack.c.l.bf16 %v2820_v20 }
 0x178   : > { %v1697_v5 = vpack.c.bf16 %v1667_v38, %v1666_v34  ;;  %v591_v34 = vunpack.c.0.s8 %v487_v23  ;;  %v595_v38 = vunpack.c.1.s8 %v487_v23 }
 0x179   : > { %v1302_v7 = vpop.f32.mrf.mxu2  ;;  %v1638_v59 = vmul.f32 %v2688_v40, %v3442_v22 }
 0x17a   : > { %v1391_v42 = vpop.f32.mrf.mxu3  ;;  %1793 = vmatmul.bf16.gmra.mxu0 %v1697_v5  ;;  %v1303_v62 = vadd.f32 %v1302_v7, %v1214_v46  ;;  %v718_v5 = vcvt.s32.f32 %v590_v54  ;;  %v722_v7 = vcvt.s32.f32 %v594_v55  ;;  %v719_v43 = vcvt.s32.f32 %v591_v34  ;;  %v1136_v48 = vpop.f32.mrf.mxu0 }
 0x17b   : > { %v723_v44 = vcvt.s32.f32 %v595_v38  ;;  %v2689_v46 = vunpack.c.h.bf16 %v2820_v20  ;;  %v1225_v49 = vpop.f32.mrf.mxu1 }
 0x17c   : > { %v1392_v51 = vadd.f32 %v1391_v42, %v1303_v62  ;;  %v798_v62 = vpack.c.bf16 %v722_v7, %v718_v5  ;;  %v1226_v20 = vadd.f32 %v1225_v49, %v1136_v48  ;;  %v2667_v48 = vld [vmem:[#allocation10 + $0x10] sm:$0xff]  ;;  %v491_v49 = vld [vmem:[%s3360_s22 + $0xf8] sm:$0xff] }
 0x17d   : > { %v799_v0 = vpack.c.bf16 %v723_v44, %v719_v43  ;;  %v1639_v2 = vmul.f32 %v2689_v46, %v3442_v22 }
 0x17e   : > { %v1668_v15 = vadd.f32 %v1636_v9, %v1392_v51  ;;  %v1224_v51 = vadd.f32 %v1223_v53, %v1134_v18 }
 0x181   : > { %v1304_v11 = vpop.f32.mrf.mxu2 }
 0x182   : > { %v1393_v32 = vpop.f32.mrf.mxu3  ;;  %v1305_v12 = vadd.f32 %v1304_v11, %v1216_v8  ;;  %v2668_v11 = vld [vmem:[#allocation10 + $0x18] sm:$0xff] }
 0x183   : > { %1989 = vmatpush.bf16.msrb.mxu1 %v2668_v11 }
 0x184   : > { %v1394_v14 = vadd.f32 %v1393_v32, %v1305_v12  ;;  %v2821_v12 = vld [vmem:[%s3439_s25 + $0x20] sm:$0xff]  }
 0x185   : > { %v2692_v21 = vunpack.c.l.bf16 %v2821_v12 }
 0x186   : > { %1346 = vmatmul.bf16.gmra.mxu2 %v794_v33  ;;  %v1669_v17 = vadd.f32 %v1637_v13, %v1394_v14  ;;  %v598_v33 = vunpack.c.2.s8 %v486_v56  ;;  %v1228_v13 = vpop.f32.mrf.mxu1  ;;  %v602_v14 = vunpack.c.3.s8 %v486_v56 }
 0x187   : > { %1435 = vmatmul.bf16.gmra.mxu3 %v795_v35  ;;  %v1139_v35 = vpop.f32.mrf.mxu0  ;;  %v1640_v34 = vmul.f32 %v2692_v21, %v3442_v22  ;;  %1990 = vmatpush.bf16.msrb.mxu1 %v2667_v48 }
 0x188   : > { %v1698_v25 = vpack.c.bf16 %v1669_v17, %v1668_v15  ;;  %v599_v15 = vunpack.c.2.s8 %v487_v23  ;;  %v603_v17 = vunpack.c.3.s8 %v487_v23  ;;  %v730_v54 = vcvt.s32.f32 %v602_v14 }
 0x189   : > { %v1307_v26 = vpop.f32.mrf.mxu2 }
 0x18a   : > { %v1396_v28 = vpop.f32.mrf.mxu3  ;;  %1798 = vmatmul.bf16.gmra.mxu0 %v1698_v25  ;;  %v1308_v42 = vadd.f32 %v1307_v26, %v1219_v29  ;;  %v2693_v25 = vunpack.c.h.bf16 %v2821_v12  ;;  %v726_v26 = vcvt.s32.f32 %v598_v33  ;;  %v727_v55 = vcvt.s32.f32 %v599_v15 }
 0x18b   : > { %v731_v29 = vcvt.s32.f32 %v603_v17 }
 0x18c   : > { %v1397_v31 = vadd.f32 %v1396_v28, %v1308_v42  ;;  %v1641_v53 = vmul.f32 %v2693_v25, %v3442_v22  ;;  %v802_v5 = vpack.c.bf16 %v730_v54, %v726_v26 }
 0x18d   : > { %v803_v23 = vpack.c.bf16 %v731_v29, %v727_v55 }
 0x18e   : > { %v1670_v8 = vadd.f32 %v1638_v59, %v1397_v31  ;;  %v1230_v43 = vpop.f32.mrf.mxu1  ;;  %v1229_v31 = vadd.f32 %v1228_v13, %v1139_v35 }
 0x18f   : > { %v1141_v42 = vpop.f32.mrf.mxu0 }
 0x190   : > { %v1231_v14 = vadd.f32 %v1230_v43, %v1141_v42  ;;  %v615_v42 = vunpack.c.2.s8 %v491_v49  ;;  %v619_v43 = vunpack.c.3.s8 %v491_v49 }
 0x191   : > { %v1309_v60 = vpop.f32.mrf.mxu2 }
 0x192   : > { %v1398_v61 = vpop.f32.mrf.mxu3  ;;  %v1310_v19 = vadd.f32 %v1309_v60, %v1221_v47  ;;  %v490_v47 = vld [vmem:[%s3360_s22 + $0xf0] sm:$0xff]  ;;  %s2673_s22 = sshll.u32 %s3169_s14, 7  ;;  %s2275_s14 = scalar_lea.sflag [#allocation6], %s3356_s27 }
 0x193   : > { %s2286_s16 = scalar_lea.hbm %s3731_s9, %s2673_s22 }
 0x194   : > { %v1399_v4 = vadd.f32 %v1398_v61, %v1310_v19  ;;  %v2822_v19 = vld [vmem:[%s3439_s25 + $0x28] sm:$0xff]   ;;  %s2289_s20 = sshll.u32 %s2286_s16, 4  ;;  %s2290_s20 = int_to_ptr.hbm [resolvable:$true] %s2289_s20 }
 0x196   : > { %1351 = vmatmul.bf16.gmra.mxu2 %v798_v62  ;;  %v1671_v9 = vadd.f32 %v1639_v2, %v1399_v4  ;;  %v606_v62 = vunpack.c.0.s8 %v490_v47  ;;  %v607_v2 = vunpack.c.0.s8 %v491_v49  ;;  %v611_v4 = vunpack.c.1.s8 %v491_v49 }
 0x197   : > { %1440 = vmatmul.bf16.gmra.mxu3 %v799_v0  ;;  %v610_v0 = vunpack.c.1.s8 %v490_v47 }
 0x198   : > { %v1699_v52 = vpack.c.bf16 %v1671_v9, %v1670_v8  ;;  %v2696_v8 = vunpack.c.l.bf16 %v2822_v19  ;;  %v2697_v9 = vunpack.c.h.bf16 %v2822_v19  ;;  %v734_v11 = vcvt.s32.f32 %v606_v62 }
 0x199   : > { %v1312_v36 = vpop.f32.mrf.mxu2  ;;  %v738_v33 = vcvt.s32.f32 %v610_v0  ;;  %v739_v12 = vcvt.s32.f32 %v611_v4  ;;  %v747_v62 = vcvt.s32.f32 %v619_v43 }
 0x19a   : > { %v1401_v32 = vpop.f32.mrf.mxu3  ;;  %1803 = vmatmul.bf16.gmra.mxu0 %v1699_v52  ;;  %v1313_v28 = vadd.f32 %v1312_v36, %v1224_v51  ;;  %v1144_v36 = vpop.f32.mrf.mxu0  ;;  %v735_v51 = vcvt.s32.f32 %v607_v2  ;;  %v1642_v15 = vmul.f32 %v2696_v8, %v3442_v22  ;;  %v1643_v35 = vmul.f32 %v2697_v9, %v3442_v22 }
 0x19b   : > { %v806_v26 = vpack.c.bf16 %v738_v33, %v734_v11 }
 0x19c   : > { %v1402_v40 = vadd.f32 %v1401_v32, %v1313_v28  ;;  %v1233_v32 = vpop.f32.mrf.mxu1  ;;  %v807_v28 = vpack.c.bf16 %v739_v12, %v735_v51  ;;  %v2665_v51 = vld [vmem:[#allocation10] sm:$0xff] }
 0x19e   : > { %v1672_v44 = vadd.f32 %v1640_v34, %v1402_v40 }
 0x1a1   : > { %v1314_v38 = vpop.f32.mrf.mxu2 }
 0x1a2   : > { %v1403_v18 = vpop.f32.mrf.mxu3  ;;  %v1315_v56 = vadd.f32 %v1314_v38, %v1226_v20  ;;  %v2666_v20 = vld [vmem:[#allocation10 + $0x8] sm:$0xff]  ;;  %v1146_v34 = vpop.f32.mrf.mxu0 }
 0x1a3   : > { %1991 = vmatpush.bf16.msrb.mxu1 %v2666_v20 }
 0x1a4   : > { %v1404_v7 = vadd.f32 %v1403_v18, %v1315_v56  ;;  %v1235_v38 = vpop.f32.mrf.mxu1  ;;  %v614_v56 = vunpack.c.2.s8 %v490_v47 }
 0x1a6   : > { %v1673_v46 = vadd.f32 %v1641_v53, %v1404_v7  ;;  %1356 = vmatmul.bf16.gmra.mxu2 %v802_v5  ;;  %v1234_v5 = vadd.f32 %v1233_v32, %v1144_v36  ;;  %v618_v7 = vunpack.c.3.s8 %v490_v47  ;;  %v742_v48 = vcvt.s32.f32 %v614_v56 }
 0x1a7   : > { %1445 = vmatmul.bf16.gmra.mxu3 %v803_v23  ;;  %v2823_v23 = vld [vmem:[%s3439_s25 + $0x30] sm:$0xff]   ;;  %1992 = vmatpush.bf16.msrb.mxu1 %v2665_v51 }
 0x1a8   : > { %v1700_v59 = vpack.c.bf16 %v1673_v46, %v1672_v44  ;;  %v2700_v44 = vunpack.c.l.bf16 %v2823_v23  ;;  %v2701_v46 = vunpack.c.h.bf16 %v2823_v23 }
 0x1a9   : > { %v1317_v60 = vpop.f32.mrf.mxu2 }
 0x1aa   : > { %v1406_v61 = vpop.f32.mrf.mxu3  ;;  %1808 = vmatmul.bf16.gmra.mxu0 %v1700_v59  ;;  %v1318_v52 = vadd.f32 %v1317_v60, %v1229_v31  ;;  %v746_v60 = vcvt.s32.f32 %v618_v7  ;;  %v1236_v31 = vadd.f32 %v1235_v38, %v1146_v34  ;;  %v1644_v19 = vmul.f32 %v2700_v44, %v3442_v22  ;;  %v1149_v49 = vpop.f32.mrf.mxu0 }
 0x1ab   : > { %v1645_v4 = vmul.f32 %v2701_v46, %v3442_v22 }
 0x1ac   : > { %v1407_v13 = vadd.f32 %v1406_v61, %v1318_v52  ;;  %v743_v61 = vcvt.s32.f32 %v615_v42  ;;  %v810_v11 = vpack.c.bf16 %v746_v60, %v742_v48  ;;  %v1238_v52 = vpop.f32.mrf.mxu1  ;;  %v2825_v42 = vld [vmem:[%s3439_s25 + $0x40] sm:$0xff]  }
 0x1ad   : > { %v2708_v44 = vunpack.c.l.bf16 %v2825_v42  ;;  %v2709_v46 = vunpack.c.h.bf16 %v2825_v42 }
 0x1ae   : > { %v1674_v55 = vadd.f32 %v1642_v15, %v1407_v13  ;;  %v811_v47 = vpack.c.bf16 %v747_v62, %v743_v61 }
 0x1af   : > { %v1648_v61 = vmul.f32 %v2708_v44, %v3442_v22 }
 0x1b1   : > { %v1319_v17 = vpop.f32.mrf.mxu2 }
 0x1b2   : > { %v1408_v21 = vpop.f32.mrf.mxu3  ;;  %v1320_v25 = vadd.f32 %v1319_v17, %v1231_v14  ;;  %v1239_v17 = vadd.f32 %v1238_v52, %v1149_v49 }
 0x1b4   : > { %v1409_v54 = vadd.f32 %v1408_v21, %v1320_v25  ;;  %v2824_v21 = vld [vmem:[%s3439_s25 + $0x38] sm:$0xff]   ;;  %v1240_v13 = vpop.f32.mrf.mxu1 }
 0x1b6   : > { %v1675_v29 = vadd.f32 %v1643_v35, %v1409_v54  ;;  %1361 = vmatmul.bf16.gmra.mxu2 %v806_v26  ;;  %v1151_v35 = vpop.f32.mrf.mxu0  ;;  %v2704_v26 = vunpack.c.l.bf16 %v2824_v21 }
 0x1b7   : > { %1450 = vmatmul.bf16.gmra.mxu3 %v807_v28  ;;  %v2705_v28 = vunpack.c.h.bf16 %v2824_v21  ;;  %v1241_v54 = vadd.f32 %v1240_v13, %v1151_v35 }
 0x1b8   : > { %v1701_v18 = vpack.c.bf16 %v1675_v29, %v1674_v55  ;;  %v1646_v34 = vmul.f32 %v2704_v26, %v3442_v22 }
 0x1b9   : > { %v1322_v53 = vpop.f32.mrf.mxu2 }
 0x1ba   : > { %v1411_v40 = vpop.f32.mrf.mxu3  ;;  %1813 = vmatmul.bf16.gmra.mxu0 %v1701_v18  ;;  %v1323_v59 = vadd.f32 %v1322_v53, %v1234_v5  ;;  %v1647_v18 = vmul.f32 %v2705_v28, %v3442_v22 }
 0x1bc   : > { %v1412_v8 = vadd.f32 %v1411_v40, %v1323_v59 }
 0x1be   : > { %v1676_v32 = vadd.f32 %v1644_v19, %v1412_v8 }
 0x1c1   : > { %v1324_v0 = vpop.f32.mrf.mxu2 }
 0x1c2   : > { %v1413_v2 = vpop.f32.mrf.mxu3  ;;  %v1325_v9 = vadd.f32 %v1324_v0, %v1236_v31  ;;  %v1649_v31 = vmul.f32 %v2709_v46, %v3442_v22 }
 0x1c4   : > { %v1414_v36 = vadd.f32 %v1413_v2, %v1325_v9 }
 0x1c6   : > { %v1677_v33 = vadd.f32 %v1645_v4, %v1414_v36  ;;  %1366 = vmatmul.bf16.gmra.mxu2 %v810_v11 }
 0x1c7   : > { %1455 = vmatmul.bf16.gmra.mxu3 %v811_v47  ;;  %v2826_v47 = vld [vmem:[%s3439_s25 + $0x48] sm:$0xff]  }
 0x1c8   : > { %v1702_v12 = vpack.c.bf16 %v1677_v33, %v1676_v32  ;;  %v2712_v49 = vunpack.c.l.bf16 %v2826_v47  ;;  %v2713_v52 = vunpack.c.h.bf16 %v2826_v47 }
 0x1c9   : > { %v1327_v14 = vpop.f32.mrf.mxu2 }
 0x1ca   : > { %v1416_v15 = vpop.f32.mrf.mxu3  ;;  %1818 = vmatmul.bf16.gmra.mxu0 %v1702_v12  ;;  %v1328_v25 = vadd.f32 %v1327_v14, %v1239_v17  ;;  %v1650_v51 = vmul.f32 %v2712_v49, %v3442_v22 }
 0x1cc   : > { %v1417_v20 = vadd.f32 %v1416_v15, %v1328_v25  ;;  %v1651_v15 = vmul.f32 %v2713_v52, %v3442_v22 }
 0x1ce   : > { %v1678_v40 = vadd.f32 %v1646_v34, %v1417_v20  ;;  %v2827_v34 = vld [vmem:[%s3439_s25 + $0x50] sm:$0xff]  }
 0x1d1   : > { %v1329_v55 = vpop.f32.mrf.mxu2 }
 0x1d2   : > { %v1418_v29 = vpop.f32.mrf.mxu3  ;;  %v1330_v38 = vadd.f32 %v1329_v55, %v1241_v54 }
 0x1d4   : > { %v1419_v53 = vadd.f32 %v1418_v29, %v1330_v38  ;;  %v2716_v38 = vunpack.c.l.bf16 %v2827_v34 }
 0x1d6   : > { %v1679_v56 = vadd.f32 %v1647_v18, %v1419_v53  ;;  %v2717_v18 = vunpack.c.h.bf16 %v2827_v34 }
 0x1d8   : > { %v1703_v5 = vpack.c.bf16 %v1679_v56, %v1678_v40  ;;  %v1653_v42 = vmul.f32 %v2717_v18, %v3442_v22 }
 0x1d9   : > { %v1332_v23 = vpop.f32.mrf.mxu2 }
 0x1da   : > { %v1421_v7 = vpop.f32.mrf.mxu3  ;;  %1823 = vmatmul.bf16.gmra.mxu0 %v1703_v5  ;;  %v1333_v43 = vadd.f32 %v1332_v23, %v3388_v45  ;;  %v3484_v45 = vld [vmem:[%s3726_s4] ss:$0 sm:$0xff]  ;;  %v1652_v5 = vmul.f32 %v2716_v38, %v3442_v22 }
 0x1dc   : > { %v1422_v60 = vadd.f32 %v1421_v7, %v1333_v43 }
 0x1de   : > { %v1680_v0 = vadd.f32 %v1648_v61, %v1422_v60 }
 0x1e1   : > { %v1334_v48 = vpop.f32.mrf.mxu2 }
 0x1e2   : > { %v1423_v59 = vpop.f32.mrf.mxu3  ;;  %v1335_v62 = vadd.f32 %v1334_v48, %v3390_v63 }
 0x1e4   : > { %v1424_v19 = vadd.f32 %v1423_v59, %v1335_v62 }
 0x1e6   : > { %v1681_v2 = vadd.f32 %v1649_v31, %v1424_v19 }
 0x1e7   : > { %v1789_v4 = vpop.f32.mrf.mxu0 }
 0x1e8   : > { %v1704_v8 = vpack.c.bf16 %v1681_v2, %v1680_v0  ;;  %v1790_v63 = vadd.f32 %v3484_v45, %v1789_v4  ;;  %v2828_v2 = vld [vmem:[%s3439_s25 + $0x58] sm:$0xff]  }
 0x1e9   : > { %v1337_v9 = vpop.f32.mrf.mxu2  ;;  %v2720_v4 = vunpack.c.l.bf16 %v2828_v2 }
 0x1ea   : > { %v1426_v11 = vpop.f32.mrf.mxu3  ;;  %1828 = vmatmul.bf16.gmra.mxu0 %v1704_v8  ;;  %v1338_v36 = vadd.f32 %v1337_v9, %v3394_v10  ;;  %v1869_v17 = vmax.f32 %v1790_v63, 0.0  ;;  %v2721_v8 = vunpack.c.h.bf16 %v2828_v2 }
 0x1eb   : > { %v1654_v49 = vmul.f32 %v2720_v4, %v3442_v22 }
 0x1ec   : > { %v1427_v21 = vadd.f32 %v1426_v11, %v1338_v36  ;;  %v1655_v36 = vmul.f32 %v2721_v8, %v3442_v22 }
 0x1ee   : > { %v1682_v28 = vadd.f32 %v1650_v51, %v1427_v21 }
 0x1ef   : > { %v1791_v32 = vpop.f32.mrf.mxu0 }
 0x1f0   : > { %v1792_v33 = vadd.f32 %v3484_v45, %v1791_v32 }
 0x1f1   : > { %v1339_v12 = vpop.f32.mrf.mxu2 }
 0x1f2   : > { %v1428_v14 = vpop.f32.mrf.mxu3  ;;  %v1870_v35 = vmax.f32 %v1792_v33, 0.0  ;;  %v1340_v13 = vadd.f32 %v1339_v12, %v3398_v30 }
 0x1f4   : > { %v1429_v25 = vadd.f32 %v1428_v14, %v1340_v13  ;;  %v1901_v26 = vpack.c.bf16 %v1870_v35, %v1869_v17 }
 0x1f6   : > { %v1683_v54 = vadd.f32 %v1651_v15, %v1429_v25  ;;  %1993 = vmatmul.bf16.vlgmr.msrb.gmra.mxu1 %v1901_v26  ;;  %v2829_v26 = vld [vmem:[%s3439_s25 + $0x60] sm:$0xff]  }
 0x1f7   : > { %v1794_v10 = vpop.f32.mrf.mxu0 }
 0x1f8   : > { %v1705_v55 = vpack.c.bf16 %v1683_v54, %v1682_v28  ;;  %v1795_v53 = vadd.f32 %v3484_v45, %v1794_v10  ;;  %v2724_v28 = vunpack.c.l.bf16 %v2829_v26  ;;  %v2725_v54 = vunpack.c.h.bf16 %v2829_v26 }
 0x1f9   : > { %v1342_v29 = vpop.f32.mrf.mxu2 }
 0x1fa   : > { %v1431_v20 = vpop.f32.mrf.mxu3  ;;  %1833 = vmatmul.bf16.gmra.mxu0 %v1705_v55  ;;  %v1343_v40 = vadd.f32 %v1342_v29, %v3400_v39  ;;  %v1871_v43 = vmax.f32 %v1795_v53, 0.0  ;;  %v1657_v18 = vmul.f32 %v2725_v54, %v3442_v22 }
 0x1fc   : > { %v1432_v44 = vadd.f32 %v1431_v20, %v1343_v40  ;;  %v1656_v20 = vmul.f32 %v2724_v28, %v3442_v22 }
 0x1fe   : > { %v1684_v61 = vadd.f32 %v1652_v5, %v1432_v44 }
 0x1ff   : > { %v1796_v56 = vpop.f32.mrf.mxu0 }
 0x200   : > { %v1797_v30 = vadd.f32 %v3484_v45, %v1796_v56 }
 0x201   : > { %v1344_v23 = vpop.f32.mrf.mxu2 }
 0x202   : > { %v1433_v7 = vpop.f32.mrf.mxu3  ;;  %v1872_v46 = vmax.f32 %v1797_v30, 0.0  ;;  %v1345_v48 = vadd.f32 %v1344_v23, %v3402_v58 }
 0x204   : > { %v1434_v59 = vadd.f32 %v1433_v7, %v1345_v48  ;;  %v1902_v60 = vpack.c.bf16 %v1872_v46, %v1871_v43  ;;  %v2830_v48 = vld [vmem:[%s3439_s25 + $0x68] sm:$0xff]  }
 0x206   : > { %v1685_v62 = vadd.f32 %v1653_v42, %v1434_v59  ;;  %1998 = vmatmul.bf16.gmra.mxu1 %v1902_v60  ;;  %v2728_v59 = vunpack.c.l.bf16 %v2830_v48  ;;  %v2729_v60 = vunpack.c.h.bf16 %v2830_v48 }
 0x207   : > { %v1799_v39 = vpop.f32.mrf.mxu0 }
 0x208   : > { %v1706_v31 = vpack.c.bf16 %v1685_v62, %v1684_v61  ;;  %v1800_v9 = vadd.f32 %v3484_v45, %v1799_v39  ;;  %v1659_v2 = vmul.f32 %v2729_v60, %v3442_v22 }
 0x209   : > { %v1347_v19 = vpop.f32.mrf.mxu2 }
 0x20a   : > { %v1436_v0 = vpop.f32.mrf.mxu3  ;;  %1838 = vmatmul.bf16.gmra.mxu0 %v1706_v31  ;;  %v1348_v11 = vadd.f32 %v1347_v19, %v3406_v6  ;;  %v1873_v32 = vmax.f32 %v1800_v9, 0.0  ;;  %v1658_v31 = vmul.f32 %v2728_v59, %v3442_v22 }
 0x20c   : > { %v1437_v33 = vadd.f32 %v1436_v0, %v1348_v11 }
 0x20e   : > { %v1686_v17 = vadd.f32 %v1654_v49, %v1437_v33  ;;  %v2831_v33 = vld [vmem:[%s3439_s25 + $0x70] sm:$0xff]  }
 0x20f   : > { %v1801_v47 = vpop.f32.mrf.mxu0 }
 0x210   : > { %v1802_v58 = vadd.f32 %v3484_v45, %v1801_v47 }
 0x211   : > { %v1349_v52 = vpop.f32.mrf.mxu2 }
 0x212   : > { %v1438_v63 = vpop.f32.mrf.mxu3  ;;  %v1874_v51 = vmax.f32 %v1802_v58, 0.0  ;;  %v1350_v12 = vadd.f32 %v1349_v52, %v3410_v27 }
 0x214   : > { %v1439_v14 = vadd.f32 %v1438_v63, %v1350_v12  ;;  %v1903_v15 = vpack.c.bf16 %v1874_v51, %v1873_v32  ;;  %v2732_v51 = vunpack.c.l.bf16 %v2831_v33  ;;  %v2733_v12 = vunpack.c.h.bf16 %v2831_v33 }
 0x216   : > { %v1687_v21 = vadd.f32 %v1655_v36, %v1439_v14  ;;  %2003 = vmatmul.bf16.gmra.mxu1 %v1903_v15 }
 0x217   : > { %v1804_v6 = vpop.f32.mrf.mxu0 }
 0x218   : > { %v1707_v35 = vpack.c.bf16 %v1687_v21, %v1686_v17  ;;  %v1805_v10 = vadd.f32 %v3484_v45, %v1804_v6  ;;  %v1660_v21 = vmul.f32 %v2732_v51, %v3442_v22 }
 0x219   : > { %v1352_v13 = vpop.f32.mrf.mxu2 }
 0x21a   : > { %v1441_v25 = vpop.f32.mrf.mxu3  ;;  %1843 = vmatmul.bf16.gmra.mxu0 %v1707_v35  ;;  %v1353_v55 = vadd.f32 %v1352_v13, %v3412_v37  ;;  %v1875_v53 = vmax.f32 %v1805_v10, 0.0  ;;  %v1661_v13 = vmul.f32 %v2733_v12, %v3442_v22  ;;  %v3554_v12 = vld [vmem:[%s3730_s8] ss:$0 sm:$0xff] }
 0x21c   : > { %v1442_v40 = vadd.f32 %v1441_v25, %v1353_v55 }
 0x21e   : > { %v1688_v7 = vadd.f32 %v1656_v20, %v1442_v40 }
 0x21f   : > { %v1806_v29 = vpop.f32.mrf.mxu0 }
 0x220   : > { %v1807_v27 = vadd.f32 %v3484_v45, %v1806_v29 }
 0x221   : > { %v1354_v34 = vpop.f32.mrf.mxu2 }
 0x222   : > { %v1443_v38 = vpop.f32.mrf.mxu3  ;;  %v1876_v56 = vmax.f32 %v1807_v27, 0.0  ;;  %v1355_v30 = vadd.f32 %v1354_v34, %v3414_v57 }
 0x224   : > { %v1444_v5 = vadd.f32 %v1443_v38, %v1355_v30  ;;  %v1904_v23 = vpack.c.bf16 %v1876_v56, %v1875_v53 }
 0x226   : > { %v1689_v42 = vadd.f32 %v1657_v18, %v1444_v5  ;;  %2008 = vmatmul.bf16.gmra.mxu1 %v1904_v23  ;;  %v2832_v18 = vld [vmem:[%s3439_s25 + $0x78] sm:$0xff]   ;;  %s3101_s25 = sshra.s32 %s2290_s20, 4  ;;  %s3102_s25 = int_to_ptr.hbm [resolvable:$true] %s3101_s25 }
 0x227   : > { %v1809_v37 = vpop.f32.mrf.mxu0  ;;  %v2736_v53 = vunpack.c.l.bf16 %v2832_v18  ;;  %v2737_v40 = vunpack.c.h.bf16 %v2832_v18  ;;  %s3103_s24 = scalar_lea.hbm %s3102_s25, 128  ;;  %p3108_p10 = scmp.lt.s32.totalorder %s3102_s25, %s3731_s9 }
 0x228   : > { %v1708_v43 = vpack.c.bf16 %v1689_v42, %v1688_v7  ;;  %v1810_v61 = vadd.f32 %v3484_v45, %v1809_v37  ;;  %p3104_p1 = scmp.ne.s32.totalorder %s3102_s25, %s3103_s24  ;;  %p3109_p12 = scmp.lt.s32.totalorder %s3107_s23, %s3103_s24 }
 0x229   : > { %v1357_v44 = vpop.f32.mrf.mxu2  ;;  %v1662_v23 = vmul.f32 %v2736_v53, %v3442_v22  ;;  %v1663_v42 = vmul.f32 %v2737_v40, %v3442_v22 }
 0x22a   : > { %v1446_v46 = vpop.f32.mrf.mxu3  ;;  %1848 = vmatmul.bf16.gmra.mxu0 %v1708_v43  ;;  %v1358_v62 = vadd.f32 %v1357_v44, %v3418_v3  ;;  %v1877_v4 = vmax.f32 %v1810_v61, 0.0  ;;  %p3105_p4 = pnand %p3104_p1, %p3336_p5  ;;  %p3110_p13 = por %p3109_p12, %p3108_p10 }
 0x22c   : > { %v1447_v8 = vadd.f32 %v1446_v46, %v1358_v62  ;;  %p3106_p8 = pneg %p3105_p4 }
 0x22e   : > { %v1690_v49 = vadd.f32 %v1658_v31, %v1447_v8  ;;  %p3111_p0 = pnand %p3110_p13, %p3106_p8 }
 0x22f   : > { %v1811_v39 = vpop.f32.mrf.mxu0 }
 0x230   : > { %v1812_v57 = vadd.f32 %v3484_v45, %v1811_v39 }
 0x231   : > { %v1359_v19 = vpop.f32.mrf.mxu2 }
 0x232   : > { %v1448_v0 = vpop.f32.mrf.mxu3  ;;  %v1878_v9 = vmax.f32 %v1812_v57, 0.0  ;;  %v1360_v11 = vadd.f32 %v1359_v19, %v3420_v16 }
 0x234   : > { %v1905_v47 = vpack.c.bf16 %v1878_v9, %v1877_v4  ;;  %v1449_v58 = vadd.f32 %v1448_v0, %v1360_v11  ;;  %v3542_v11 = vld [vmem:[%s3728_s6] ss:$0 sm:$0xff] }
 0x236   : > { %v1691_v52 = vadd.f32 %v1659_v2, %v1449_v58  ;;  %2013 = vmatmul.bf16.gmra.mxu1 %v1905_v47 }
 0x237   : > { %v1814_v3 = vpop.f32.mrf.mxu0 }
 0x238   : > { %v1709_v63 = vpack.c.bf16 %v1691_v52, %v1690_v49  ;;  %v1815_v14 = vadd.f32 %v3484_v45, %v1814_v3 }
 0x239   : > { %v1362_v36 = vpop.f32.mrf.mxu2 }
 0x23a   : > { %v1451_v32 = vpop.f32.mrf.mxu3  ;;  %1853 = vmatmul.bf16.gmra.mxu0 %v1709_v63  ;;  %v1363_v15 = vadd.f32 %v1362_v36, %v3422_v24  ;;  %v1879_v25 = vmax.f32 %v1815_v14, 0.0 }
 0x23c   : > { %v1452_v26 = vadd.f32 %v1451_v32, %v1363_v15  ;;  %v3548_v32 = vld [vmem:[%s3729_s7] ss:$0 sm:$0xff] }
 0x23e   : > { %v1692_v29 = vadd.f32 %v1660_v21, %v1452_v26 }
 0x23f   : > { %v1816_v17 = vpop.f32.mrf.mxu0 }
 0x240   : > { %v1817_v16 = vadd.f32 %v3484_v45, %v1816_v17 }
 0x241   : > { %v1364_v6 = vpop.f32.mrf.mxu2 }
 0x242   : > { %v1453_v35 = vpop.f32.mrf.mxu3  ;;  %v1880_v28 = vmax.f32 %v1817_v16, 0.0  ;;  %v1365_v54 = vadd.f32 %v1364_v6, %v3424_v41 }
 0x244   : > { %v1906_v10 = vpack.c.bf16 %v1880_v28, %v1879_v25  ;;  %v1454_v55 = vadd.f32 %v1453_v35, %v1365_v54 }
 0x246   : > { %v1693_v27 = vadd.f32 %v1661_v13, %v1454_v55  ;;  %2018 = vmatmul.bf16.gmra.mxu1 %v1906_v10 }
 0x247   : > { %v1819_v24 = vpop.f32.mrf.mxu0 }
 0x248   : > { %v1710_v20 = vpack.c.bf16 %v1693_v27, %v1692_v29  ;;  %v1820_v56 = vadd.f32 %v3484_v45, %v1819_v24 }
 0x249   : > { %v1367_v34 = vpop.f32.mrf.mxu2 }
 0x24a   : > { %v1456_v38 = vpop.f32.mrf.mxu3  ;;  %1858 = vmatmul.bf16.gmra.mxu0 %v1710_v20  ;;  %v1368_v30 = vadd.f32 %v1367_v34, %v3428_v50  ;;  %v1881_v37 = vmax.f32 %v1820_v56, 0.0 }
 0x24c   : > { %v1457_v43 = vadd.f32 %v1456_v38, %v1368_v30 }
 0x24e   : > { %v1694_v61 = vadd.f32 %v1662_v23, %v1457_v43 }
 0x24f   : > { %v1821_v5 = vpop.f32.mrf.mxu0 }
 0x250   : > { %v1822_v41 = vadd.f32 %v3484_v45, %v1821_v5 }
 0x251   : > { %v1369_v7 = vpop.f32.mrf.mxu2 }
 0x252   : > { %v1882_v44 = vmax.f32 %v1822_v41, 0.0  ;;  %v1370_v46 = vadd.f32 %v1369_v7, %v3435_v1  ;;  %v1458_v48 = vpop.f32.mrf.mxu3 }
 0x254   : > { %v1907_v59 = vpack.c.bf16 %v1882_v44, %v1881_v37  ;;  %v1459_v60 = vadd.f32 %v1458_v48, %v1370_v46 }
 0x256   : > { %v1695_v62 = vadd.f32 %v1663_v42, %v1459_v60  ;;  %2023 = vmatmul.bf16.gmra.mxu1 %v1907_v59 }
 0x257   : > { %v1824_v50 = vpop.f32.mrf.mxu0 }
 0x258   : > { %v1711_v39 = vpack.c.bf16 %v1695_v62, %v1694_v61  ;;  %v1825_v57 = vadd.f32 %v3484_v45, %v1824_v50 }
 0x25a   : > { %1863 = vmatmul.bf16.gmra.mxu0 %v1711_v39  ;;  %v1883_v22 = vmax.f32 %v1825_v57, 0.0 }
 0x25f   : > { %v1826_v31 = vpop.f32.mrf.mxu0 }
 0x260   : > { %v1827_v19 = vadd.f32 %v3484_v45, %v1826_v31 }
 0x262   : > { %v1884_v0 = vmax.f32 %v1827_v19, 0.0 }
 0x264   : > { %v1908_v2 = vpack.c.bf16 %v1884_v0, %v1883_v22 }
 0x266   : > { %2028 = vmatmul.bf16.gmra.mxu1 %v1908_v2 }
 0x267   : > { %v1829_v4 = vpop.f32.mrf.mxu0 }
 0x268   : > { %v1830_v1 = vadd.f32 %v3484_v45, %v1829_v4 }
 0x26a   : > { %v1885_v47 = vmax.f32 %v1830_v1, 0.0 }
 0x26f   : > { %v1831_v8 = vpop.f32.mrf.mxu0 }
 0x270   : > { %v1832_v9 = vadd.f32 %v3484_v45, %v1831_v8 }
 0x272   : > { %v1886_v58 = vmax.f32 %v1832_v9, 0.0 }
 0x273   : > { %v1994_v49 = vpop.f32.mrf.mxu1 }
 0x274   : > { %v1909_v52 = vpack.c.bf16 %v1886_v58, %v1885_v47  ;;  %v1995_v3 = vadd.f32 %v3542_v11, %v1994_v49 }
 0x276   : > { %2033 = vmatmul.bf16.gmra.mxu1 %v1909_v52  ;;  %v2074_v36 = vmax.f32 %v1995_v3, 0.0 }
 0x277   : > { %v1834_v63 = vpop.f32.mrf.mxu0 }
 0x278   : > { %v2110_v51 = vmul.f32 %v3548_v32, %v2074_v36  ;;  %v1835_v15 = vadd.f32 %v3484_v45, %v1834_v63 }
 0x27a   : > { %v2146_v21 = vadd.f32 %v3554_v12, %v2110_v51  ;;  %v1887_v13 = vmax.f32 %v1835_v15, 0.0 }
 0x27b   : > { %v1996_v33 = vpop.f32.mrf.mxu1 }
 0x27c   : > { %v1997_v14 = vadd.f32 %v3542_v11, %v1996_v33  ;;  %v2178_v54 = vmax.f32 %v2146_v21, 0.0 }
 0x27e   : > { %v2075_v17 = vmax.f32 %v1997_v14, 0.0 }
 0x27f   : > { %v1836_v16 = vpop.f32.mrf.mxu0 }
 0x280   : > { %v2111_v6 = vmul.f32 %v3548_v32, %v2075_v17  ;;  %v1837_v35 = vadd.f32 %v3484_v45, %v1836_v16 }
 0x282   : > { %v2147_v25 = vadd.f32 %v3554_v12, %v2111_v6  ;;  %v1888_v26 = vmax.f32 %v1837_v35, 0.0 }
 0x283   : > { %v1999_v28 = vpop.f32.mrf.mxu1 }
 0x284   : > { %v2179_v10 = vmax.f32 %v2147_v25, 0.0  ;;  %v1910_v55 = vpack.c.bf16 %v1888_v26, %v1887_v13  ;;  %v2000_v29 = vadd.f32 %v3542_v11, %v1999_v28 }
 0x286   : > { %v2741_v27 = vpack.c.bf16 %v2179_v10, %v2178_v54  ;;  %2038 = vmatmul.bf16.gmra.mxu1 %v1910_v55  ;;  %v2076_v20 = vmax.f32 %v2000_v29, 0.0 }
 0x287   : > { %v1839_v24 = vpop.f32.mrf.mxu0 }
 0x288   : > { %2742 = vst [vmem:[%s3564_s2] sm:$0xff] %v2741_v27   ;;  %v2112_v38 = vmul.f32 %v3548_v32, %v2076_v20  ;;  %v1840_v53 = vadd.f32 %v3484_v45, %v1839_v24 }
 0x28a   : > { %v2148_v30 = vadd.f32 %v3554_v12, %v2112_v38  ;;  %v1889_v23 = vmax.f32 %v1840_v53, 0.0 }
 0x28b   : > { %v2001_v34 = vpop.f32.mrf.mxu1 }
 0x28c   : > { %v2002_v18 = vadd.f32 %v3542_v11, %v2001_v34  ;;  %v2180_v43 = vmax.f32 %v2148_v30, 0.0 }
 0x28e   : > { %v2077_v40 = vmax.f32 %v2002_v18, 0.0 }
 0x28f   : > { %v1841_v56 = vpop.f32.mrf.mxu0 }
 0x290   : > { %v2113_v5 = vmul.f32 %v3548_v32, %v2077_v40  ;;  %v1842_v41 = vadd.f32 %v3484_v45, %v1841_v56 }
 0x292   : > { %v2149_v7 = vadd.f32 %v3554_v12, %v2113_v5  ;;  %v1890_v42 = vmax.f32 %v1842_v41, 0.0 }
 0x293   : > { %v2004_v37 = vpop.f32.mrf.mxu1 }
 0x294   : > { %v2181_v44 = vmax.f32 %v2149_v7, 0.0  ;;  %v1911_v46 = vpack.c.bf16 %v1890_v42, %v1889_v23  ;;  %v2005_v48 = vadd.f32 %v3542_v11, %v2004_v37 }
 0x296   : > { %v2746_v59 = vpack.c.bf16 %v2181_v44, %v2180_v43  ;;  %2043 = vmatmul.bf16.gmra.mxu1 %v1911_v46  ;;  %v2078_v61 = vmax.f32 %v2005_v48, 0.0 }
 0x297   : > { %v1844_v60 = vpop.f32.mrf.mxu0 }
 0x298   : > { %2833 = vst [vmem:[%s3564_s2 + $0x8] sm:$0xff] %v2746_v59   ;;  %v2114_v50 = vmul.f32 %v3548_v32, %v2078_v61  ;;  %v1845_v57 = vadd.f32 %v3484_v45, %v1844_v60 }
 0x29a   : > { %v2150_v22 = vadd.f32 %v3554_v12, %v2114_v50  ;;  %v1891_v4 = vmax.f32 %v1845_v57, 0.0 }
 0x29b   : > { %v2006_v62 = vpop.f32.mrf.mxu1 }
 0x29c   : > { %v2007_v39 = vadd.f32 %v3542_v11, %v2006_v62  ;;  %v2182_v47 = vmax.f32 %v2150_v22, 0.0 }
 0x29e   : > { %v2079_v31 = vmax.f32 %v2007_v39, 0.0 }
 0x29f   : > { %v1846_v19 = vpop.f32.mrf.mxu0 }
 0x2a0   : > { %v2115_v0 = vmul.f32 %v3548_v32, %v2079_v31  ;;  %v1847_v2 = vadd.f32 %v3484_v45, %v1846_v19 }
 0x2a2   : > { %v2151_v1 = vadd.f32 %v3554_v12, %v2115_v0  ;;  %v1892_v8 = vmax.f32 %v1847_v2, 0.0 }
 0x2a3   : > { %v2009_v9 = vpop.f32.mrf.mxu1 }
 0x2a4   : > { %v2183_v58 = vmax.f32 %v2151_v1, 0.0  ;;  %v1912_v49 = vpack.c.bf16 %v1892_v8, %v1891_v4  ;;  %v2010_v52 = vadd.f32 %v3542_v11, %v2009_v9 }
 0x2a6   : > { %v2751_v3 = vpack.c.bf16 %v2183_v58, %v2182_v47  ;;  %2048 = vmatmul.bf16.gmra.mxu1 %v1912_v49  ;;  %v2080_v36 = vmax.f32 %v2010_v52, 0.0 }
 0x2a7   : > { %v1849_v63 = vpop.f32.mrf.mxu0 }
 0x2a8   : > { %2834 = vst [vmem:[%s3564_s2 + $0x10] sm:$0xff] %v2751_v3   ;;  %v2116_v51 = vmul.f32 %v3548_v32, %v2080_v36  ;;  %v1850_v15 = vadd.f32 %v3484_v45, %v1849_v63 }
 0x2aa   : > { %v2152_v21 = vadd.f32 %v3554_v12, %v2116_v51  ;;  %v1893_v13 = vmax.f32 %v1850_v15, 0.0 }
 0x2ab   : > { %v2011_v33 = vpop.f32.mrf.mxu1 }
 0x2ac   : > { %v2012_v14 = vadd.f32 %v3542_v11, %v2011_v33  ;;  %v2184_v54 = vmax.f32 %v2152_v21, 0.0 }
 0x2ae   : > { %v2081_v17 = vmax.f32 %v2012_v14, 0.0 }
 0x2af   : > { %v1851_v16 = vpop.f32.mrf.mxu0 }
 0x2b0   : > { %v2117_v6 = vmul.f32 %v3548_v32, %v2081_v17  ;;  %v1852_v35 = vadd.f32 %v3484_v45, %v1851_v16 }
 0x2b2   : > { %v2153_v25 = vadd.f32 %v3554_v12, %v2117_v6  ;;  %v1894_v26 = vmax.f32 %v1852_v35, 0.0 }
 0x2b3   : > { %v2014_v28 = vpop.f32.mrf.mxu1 }
 0x2b4   : > { %v2185_v10 = vmax.f32 %v2153_v25, 0.0  ;;  %v1913_v55 = vpack.c.bf16 %v1894_v26, %v1893_v13  ;;  %v2015_v29 = vadd.f32 %v3542_v11, %v2014_v28 }
 0x2b6   : > { %v2756_v27 = vpack.c.bf16 %v2185_v10, %v2184_v54  ;;  %2053 = vmatmul.bf16.gmra.mxu1 %v1913_v55  ;;  %v2082_v20 = vmax.f32 %v2015_v29, 0.0 }
 0x2b7   : > { %v1854_v24 = vpop.f32.mrf.mxu0 }
 0x2b8   : > { %2835 = vst [vmem:[%s3564_s2 + $0x18] sm:$0xff] %v2756_v27   ;;  %v2118_v38 = vmul.f32 %v3548_v32, %v2082_v20  ;;  %v1855_v53 = vadd.f32 %v3484_v45, %v1854_v24 }
 0x2ba   : > { %v2154_v30 = vadd.f32 %v3554_v12, %v2118_v38  ;;  %v1895_v23 = vmax.f32 %v1855_v53, 0.0 }
 0x2bb   : > { %v2016_v34 = vpop.f32.mrf.mxu1 }
 0x2bc   : > { %v2017_v18 = vadd.f32 %v3542_v11, %v2016_v34  ;;  %v2186_v43 = vmax.f32 %v2154_v30, 0.0 }
 0x2be   : > { %v2083_v40 = vmax.f32 %v2017_v18, 0.0 }
 0x2bf   : > { %v1856_v56 = vpop.f32.mrf.mxu0 }
 0x2c0   : > { %v2119_v5 = vmul.f32 %v3548_v32, %v2083_v40  ;;  %v1857_v41 = vadd.f32 %v3484_v45, %v1856_v56 }
 0x2c2   : > { %v2155_v7 = vadd.f32 %v3554_v12, %v2119_v5  ;;  %v1896_v42 = vmax.f32 %v1857_v41, 0.0 }
 0x2c3   : > { %v2019_v37 = vpop.f32.mrf.mxu1 }
 0x2c4   : > { %v2187_v44 = vmax.f32 %v2155_v7, 0.0  ;;  %v1914_v46 = vpack.c.bf16 %v1896_v42, %v1895_v23  ;;  %v2020_v48 = vadd.f32 %v3542_v11, %v2019_v37 }
 0x2c6   : > { %v2761_v59 = vpack.c.bf16 %v2187_v44, %v2186_v43  ;;  %2058 = vmatmul.bf16.gmra.mxu1 %v1914_v46  ;;  %v2084_v61 = vmax.f32 %v2020_v48, 0.0 }
 0x2c7   : > { %v1859_v60 = vpop.f32.mrf.mxu0 }
 0x2c8   : > { %2836 = vst [vmem:[%s3564_s2 + $0x20] sm:$0xff] %v2761_v59   ;;  %v2120_v50 = vmul.f32 %v3548_v32, %v2084_v61  ;;  %v1860_v57 = vadd.f32 %v3484_v45, %v1859_v60 }
 0x2ca   : > { %v2156_v22 = vadd.f32 %v3554_v12, %v2120_v50  ;;  %v1897_v4 = vmax.f32 %v1860_v57, 0.0 }
 0x2cb   : > { %v2021_v62 = vpop.f32.mrf.mxu1 }
 0x2cc   : > { %v2022_v39 = vadd.f32 %v3542_v11, %v2021_v62  ;;  %v2188_v47 = vmax.f32 %v2156_v22, 0.0 }
 0x2ce   : > { %v2085_v31 = vmax.f32 %v2022_v39, 0.0 }
 0x2cf   : > { %v1861_v19 = vpop.f32.mrf.mxu0 }
 0x2d0   : > { %v2121_v0 = vmul.f32 %v3548_v32, %v2085_v31  ;;  %v1862_v2 = vadd.f32 %v3484_v45, %v1861_v19 }
 0x2d2   : > { %v2157_v1 = vadd.f32 %v3554_v12, %v2121_v0  ;;  %v1898_v8 = vmax.f32 %v1862_v2, 0.0 }
 0x2d3   : > { %v2024_v9 = vpop.f32.mrf.mxu1 }
 0x2d4   : > { %v2189_v58 = vmax.f32 %v2157_v1, 0.0  ;;  %v1915_v49 = vpack.c.bf16 %v1898_v8, %v1897_v4  ;;  %v2025_v52 = vadd.f32 %v3542_v11, %v2024_v9 }
 0x2d6   : > { %v2766_v3 = vpack.c.bf16 %v2189_v58, %v2188_v47  ;;  %2063 = vmatmul.bf16.gmra.mxu1 %v1915_v49  ;;  %v2086_v36 = vmax.f32 %v2025_v52, 0.0 }
 0x2d7   : > { %v1864_v63 = vpop.f32.mrf.mxu0 }
 0x2d8   : > { %2837 = vst [vmem:[%s3564_s2 + $0x28] sm:$0xff] %v2766_v3   ;;  %v2122_v51 = vmul.f32 %v3548_v32, %v2086_v36  ;;  %v1865_v15 = vadd.f32 %v3484_v45, %v1864_v63 }
 0x2da   : > { %v2158_v21 = vadd.f32 %v3554_v12, %v2122_v51  ;;  %v1899_v13 = vmax.f32 %v1865_v15, 0.0 }
 0x2db   : > { %v2026_v33 = vpop.f32.mrf.mxu1 }
 0x2dc   : > { %v2027_v14 = vadd.f32 %v3542_v11, %v2026_v33  ;;  %v2190_v54 = vmax.f32 %v2158_v21, 0.0 }
 0x2de   : > { %v2087_v17 = vmax.f32 %v2027_v14, 0.0 }
 0x2df   : > { %v1866_v16 = vpop.f32.mrf.mxu0 }
 0x2e0   : > { %v2123_v6 = vmul.f32 %v3548_v32, %v2087_v17  ;;  %v1867_v35 = vadd.f32 %v3484_v45, %v1866_v16 }
 0x2e2   : > { %v2159_v25 = vadd.f32 %v3554_v12, %v2123_v6  ;;  %v1900_v26 = vmax.f32 %v1867_v35, 0.0 }
 0x2e3   : > { %v2029_v28 = vpop.f32.mrf.mxu1 }
 0x2e4   : > { %v2191_v10 = vmax.f32 %v2159_v25, 0.0  ;;  %v1916_v55 = vpack.c.bf16 %v1900_v26, %v1899_v13  ;;  %v2030_v29 = vadd.f32 %v3542_v11, %v2029_v28 }
 0x2e6   : > { %v2771_v27 = vpack.c.bf16 %v2191_v10, %v2190_v54  ;;  %2068 = vmatmul.bf16.gmra.mxu1 %v1916_v55  ;;  %v2088_v24 = vmax.f32 %v2030_v29, 0.0 }
 0x2e8   : > { %2838 = vst [vmem:[%s3564_s2 + $0x30] sm:$0xff] %v2771_v27   ;;  %v2124_v34 = vmul.f32 %v3548_v32, %v2088_v24 }
 0x2ea   : > { %v2160_v18 = vadd.f32 %v3554_v12, %v2124_v34 }
 0x2eb   : > { %v2031_v20 = vpop.f32.mrf.mxu1 }
 0x2ec   : > { %v2032_v45 = vadd.f32 %v3542_v11, %v2031_v20  ;;  %v2192_v30 = vmax.f32 %v2160_v18, 0.0 }
 0x2ee   : > { %v2089_v38 = vmax.f32 %v2032_v45, 0.0 }
 0x2f0   : > { %v2125_v53 = vmul.f32 %v3548_v32, %v2089_v38 }
 0x2f2   : > { %v2161_v40 = vadd.f32 %v3554_v12, %v2125_v53 }
 0x2f3   : > { %v2034_v56 = vpop.f32.mrf.mxu1 }
 0x2f4   : > { %v2193_v5 = vmax.f32 %v2161_v40, 0.0  ;;  %v2035_v41 = vadd.f32 %v3542_v11, %v2034_v56 }
 0x2f6   : > { %v2776_v23 = vpack.c.bf16 %v2193_v5, %v2192_v30  ;;  %v2090_v7 = vmax.f32 %v2035_v41, 0.0 }
 0x2f8   : > { %2839 = vst [vmem:[%s3564_s2 + $0x38] sm:$0xff] %v2776_v23   ;;  %v2126_v37 = vmul.f32 %v3548_v32, %v2090_v7 }
 0x2fa   : > { %v2162_v46 = vadd.f32 %v3554_v12, %v2126_v37 }
 0x2fb   : > { %v2036_v42 = vpop.f32.mrf.mxu1 }
 0x2fc   : > { %v2037_v43 = vadd.f32 %v3542_v11, %v2036_v42  ;;  %v2194_v61 = vmax.f32 %v2162_v46, 0.0 }
 0x2fe   : > { %v2091_v44 = vmax.f32 %v2037_v43, 0.0 }
 0x300   : > { %v2127_v48 = vmul.f32 %v3548_v32, %v2091_v44 }
 0x302   : > { %v2163_v59 = vadd.f32 %v3554_v12, %v2127_v48 }
 0x303   : > { %v2039_v60 = vpop.f32.mrf.mxu1 }
 0x304   : > { %v2195_v62 = vmax.f32 %v2163_v59, 0.0  ;;  %v2040_v50 = vadd.f32 %v3542_v11, %v2039_v60 }
 0x306   : > { %v2781_v39 = vpack.c.bf16 %v2195_v62, %v2194_v61  ;;  %v2092_v57 = vmax.f32 %v2040_v50, 0.0 }
 0x308   : > { %2840 = vst [vmem:[%s3564_s2 + $0x40] sm:$0xff] %v2781_v39   ;;  %v2128_v19 = vmul.f32 %v3548_v32, %v2092_v57 }
 0x30a   : > { %v2164_v2 = vadd.f32 %v3554_v12, %v2128_v19 }
 0x30b   : > { %v2041_v31 = vpop.f32.mrf.mxu1 }
 0x30c   : > { %v2042_v22 = vadd.f32 %v3542_v11, %v2041_v31  ;;  %v2196_v9 = vmax.f32 %v2164_v2, 0.0 }
 0x30e   : > { %v2093_v0 = vmax.f32 %v2042_v22, 0.0 }
 0x310   : > { %v2129_v4 = vmul.f32 %v3548_v32, %v2093_v0 }
 0x312   : > { %v2165_v1 = vadd.f32 %v3554_v12, %v2129_v4 }
 0x313   : > { %v2044_v8 = vpop.f32.mrf.mxu1 }
 0x314   : > { %v2197_v47 = vmax.f32 %v2165_v1, 0.0  ;;  %v2045_v58 = vadd.f32 %v3542_v11, %v2044_v8 }
 0x316   : > { %v2786_v49 = vpack.c.bf16 %v2197_v47, %v2196_v9  ;;  %v2094_v52 = vmax.f32 %v2045_v58, 0.0 }
 0x318   : > { %2841 = vst [vmem:[%s3564_s2 + $0x48] sm:$0xff] %v2786_v49   ;;  %v2130_v63 = vmul.f32 %v3548_v32, %v2094_v52 }
 0x31a   : > { %v2166_v51 = vadd.f32 %v3554_v12, %v2130_v63 }
 0x31b   : > { %v2046_v3 = vpop.f32.mrf.mxu1 }
 0x31c   : > { %v2047_v36 = vadd.f32 %v3542_v11, %v2046_v3  ;;  %v2198_v16 = vmax.f32 %v2166_v51, 0.0 }
 0x31e   : > { %v2095_v33 = vmax.f32 %v2047_v36, 0.0 }
 0x320   : > { %v2131_v14 = vmul.f32 %v3548_v32, %v2095_v33 }
 0x322   : > { %v2167_v15 = vadd.f32 %v3554_v12, %v2131_v14 }
 0x323   : > { %v2049_v17 = vpop.f32.mrf.mxu1 }
 0x324   : > { %v2199_v21 = vmax.f32 %v2167_v15, 0.0  ;;  %v2050_v6 = vadd.f32 %v3542_v11, %v2049_v17 }
 0x326   : > { %v2791_v35 = vpack.c.bf16 %v2199_v21, %v2198_v16  ;;  %v2096_v13 = vmax.f32 %v2050_v6, 0.0 }
 0x328   : > { %2842 = vst [vmem:[%s3564_s2 + $0x50] sm:$0xff] %v2791_v35   ;;  %v2132_v26 = vmul.f32 %v3548_v32, %v2096_v13 }
 0x32a   : > { %v2168_v10 = vadd.f32 %v3554_v12, %v2132_v26 }
 0x32b   : > { %v2051_v25 = vpop.f32.mrf.mxu1 }
 0x32c   : > { %v2052_v28 = vadd.f32 %v3542_v11, %v2051_v25  ;;  %v2200_v24 = vmax.f32 %v2168_v10, 0.0 }
 0x32e   : > { %v2097_v54 = vmax.f32 %v2052_v28, 0.0 }
 0x330   : > { %v2133_v55 = vmul.f32 %v3548_v32, %v2097_v54 }
 0x332   : > { %v2169_v29 = vadd.f32 %v3554_v12, %v2133_v55 }
 0x333   : > { %v2054_v27 = vpop.f32.mrf.mxu1 }
 0x334   : > { %v2201_v20 = vmax.f32 %v2169_v29, 0.0  ;;  %v2055_v34 = vadd.f32 %v3542_v11, %v2054_v27 }
 0x336   : > { %v2796_v45 = vpack.c.bf16 %v2201_v20, %v2200_v24  ;;  %v2098_v38 = vmax.f32 %v2055_v34, 0.0 }
 0x338   : > { %2843 = vst [vmem:[%s3564_s2 + $0x58] sm:$0xff] %v2796_v45   ;;  %v2134_v53 = vmul.f32 %v3548_v32, %v2098_v38 }
 0x33a   : > { %v2170_v30 = vadd.f32 %v3554_v12, %v2134_v53 }
 0x33b   : > { %v2056_v18 = vpop.f32.mrf.mxu1 }
 0x33c   : > { %v2057_v40 = vadd.f32 %v3542_v11, %v2056_v18  ;;  %v2202_v7 = vmax.f32 %v2170_v30, 0.0 }
 0x33e   : > { %v2099_v56 = vmax.f32 %v2057_v40, 0.0 }
 0x340   : > { %v2135_v5 = vmul.f32 %v3548_v32, %v2099_v56 }
 0x342   : > { %v2171_v41 = vadd.f32 %v3554_v12, %v2135_v5 }
 0x343   : > { %v2059_v23 = vpop.f32.mrf.mxu1 }
 0x344   : > { %v2203_v42 = vmax.f32 %v2171_v41, 0.0  ;;  %v2060_v37 = vadd.f32 %v3542_v11, %v2059_v23 }
 0x346   : > { %v2801_v43 = vpack.c.bf16 %v2203_v42, %v2202_v7  ;;  %v2100_v44 = vmax.f32 %v2060_v37, 0.0 }
 0x348   : > { %2844 = vst [vmem:[%s3564_s2 + $0x60] sm:$0xff] %v2801_v43   ;;  %v2136_v48 = vmul.f32 %v3548_v32, %v2100_v44 }
 0x34a   : > { %v2172_v61 = vadd.f32 %v3554_v12, %v2136_v48 }
 0x34b   : > { %v2061_v46 = vpop.f32.mrf.mxu1 }
 0x34c   : > { %v2062_v59 = vadd.f32 %v3542_v11, %v2061_v46  ;;  %v2204_v57 = vmax.f32 %v2172_v61, 0.0 }
 0x34e   : > { %v2101_v60 = vmax.f32 %v2062_v59, 0.0 }
 0x350   : > { %v2137_v62 = vmul.f32 %v3548_v32, %v2101_v60 }
 0x352   : > { %v2173_v50 = vadd.f32 %v3554_v12, %v2137_v62 }
 0x353   : > { %v2064_v39 = vpop.f32.mrf.mxu1 }
 0x354   : > { %v2205_v31 = vmax.f32 %v2173_v50, 0.0  ;;  %v2065_v19 = vadd.f32 %v3542_v11, %v2064_v39 }
 0x356   : > { %v2806_v22 = vpack.c.bf16 %v2205_v31, %v2204_v57  ;;  %v2102_v0 = vmax.f32 %v2065_v19, 0.0 }
 0x358   : > { %2845 = vst [vmem:[%s3564_s2 + $0x68] sm:$0xff] %v2806_v22   ;;  %v2138_v4 = vmul.f32 %v3548_v32, %v2102_v0 }
 0x35a   : > { %v2174_v9 = vadd.f32 %v3554_v12, %v2138_v4 }
 0x35b   : > { %v2066_v2 = vpop.f32.mrf.mxu1 }
 0x35c   : > { %v2067_v1 = vadd.f32 %v3542_v11, %v2066_v2  ;;  %v2206_v52 = vmax.f32 %v2174_v9, 0.0 }
 0x35e   : > { %v2103_v8 = vmax.f32 %v2067_v1, 0.0 }
 0x360   : > { %v2139_v47 = vmul.f32 %v3548_v32, %v2103_v8 }
 0x362   : > { %v2175_v58 = vadd.f32 %v3554_v12, %v2139_v47 }
 0x363   : > { %v2069_v49 = vpop.f32.mrf.mxu1 }
 0x364   : > { %v2207_v3 = vmax.f32 %v2175_v58, 0.0  ;;  %v2070_v63 = vadd.f32 %v3542_v11, %v2069_v49 }
 0x366   : > { %v2811_v36 = vpack.c.bf16 %v2207_v3, %v2206_v52  ;;  %v2104_v33 = vmax.f32 %v2070_v63, 0.0 }
 0x368   : > { %2846 = vst [vmem:[%s3564_s2 + $0x70] sm:$0xff] %v2811_v36   ;;  %v2140_v14 = vmul.f32 %v3548_v32, %v2104_v33 }
 0x36a   : > { %v2176_v16 = vadd.f32 %v3554_v12, %v2140_v14 }
 0x36b   : > { %v2071_v51 = vpop.f32.mrf.mxu1 }
 0x36c   : > { %v2072_v15 = vadd.f32 %v3542_v11, %v2071_v51  ;;  %v2208_v35 = vmax.f32 %v2176_v16, 0.0 }
 0x36e   : > { %v2105_v17 = vmax.f32 %v2072_v15, 0.0 }
 0x370   : > { %v2141_v21 = vmul.f32 %v3548_v32, %v2105_v17 }
 0x372   : > { %v2177_v6 = vadd.f32 %v3554_v12, %v2141_v21 }
 0x374   : > { %v2209_v13 = vmax.f32 %v2177_v6, 0.0 }
 0x376   : > { %v2816_v11 = vpack.c.bf16 %v2209_v13, %v2208_v35 }
 0x378   : > { %2847 = vst [vmem:[%s3564_s2 + $0x78] sm:$0xff] %v2816_v11  }
 0x379   : > { %3114 = shalt.err (!%p3111_p0)
}
 0x37a   : > { %s3186_s27 = smov 64   ;;  %s3187_s30 = smov 4  }
 0x37b   : > { %2878 = dma.vmem_to_hbm [thread:$0]  (%p3336_p5), %s2288_s18, 2048, %s2290_s20, %s2275_s14, %s3186_s27, %s3186_s27, %s3187_s30  }
 0x37c PF: > { %s3754_s28 = sld [smem:[#allocation17_spill]]  ;;  %s2304_s2 = sand.u32 1, %s3157_s11  }
 0x37d   : > { %p2895_p3 = pnand %p2413_p11, %p3290_p6  ;;  %s2305_s22 = scalar_lea.sflag [#allocation6], %s2304_s2 }
 0x37f   : > { %p2896_p7 = pneg %p2895_p3 }
 0x381   : > { %3152 = dma.done.wait (%p2896_p7), %s2305_s22, 2048  }
 0x382   : > { %3154 = vsyncadd (%p2896_p7), %s2305_s22, 4294965248  ;;  %s28_s16 = sadd.s32 1, %s3754_s28   ;;  %s3755_s10 = sld [smem:[#allocation19_spill]] }
 0x383   : > { %p25_p9 = scmp.ge.s32.totalorder %s28_s16, 4   ;;  %s3756_s11 = smov %s3161_s12 }
 0x384   : > { %s3757_s12 = smov %s3165_s13  ;;  %s3758_s13 = smov %s3345_s17 }
 0x385   : > { %s3759_s14 = smov %s3173_s15  ;;  %27 = sbr.rel (!%p25_p9) target bundleno = 13 (0xd), region = 123 }
 0x388   : > { %s3760_s15 = smov %s3755_s10 }
 0x38a   :  { %2311 = vsyncpa [#allocation5], 1 }
 0x38b   :  { %2313 = vsyncpa [#allocation5 + $0x1], 1 }
 0x38c   :  { %2314 = vsyncpa [#allocation8], 1 }
 0x38d   :  { %2315 = vsyncpa [#allocation11], 1 }
 0x38e   :  { %2316 = vsyncpa [#allocation6], 1 }
 0x38f   :  { %2318 = vsyncpa [#allocation6 + $0x1], 1 }

</bundles_post_ra>
